<compile_context>
chip_gen: v6e
topology: v6e:2x2x1
jax: 0.10.0
libtpu: 0.0.40
codegen_flags: <defaults>
</compile_context>

<pallas_src>
import jax
import jax.numpy as jnp
from jax.experimental import pallas as pl
from jax.experimental.pallas import tpu as pltpu


# ------------------------------ Fused kernel ----------------------------------

def make_fused_kernel(T, BB, I, H, O_pad):
    """Fused 2-layer wavefront LSTM + FC head for one batch block of BB rows."""
    GH = 4 * H

    def kernel(x_ref, wih1_ref, b1_ref, wbig_ref, b2_ref, wfc_ref, bfc_ref, out_ref):
        f32 = jnp.float32
        bf16 = jnp.bfloat16

        # Per-lane gate scale: sigmoid gates (i, f, o) use the tanh identity
        # sigmoid(x) = 0.5*(tanh(0.5*x)+1), candidate gate g uses plain tanh.
        lane = jax.lax.broadcasted_iota(jnp.int32, (BB, GH), 1)
        gate_scale = jnp.where(lane < 3 * H, jnp.float32(0.5), jnp.float32(1.0))

        def lstm_update(gates, c):
            t = jnp.tanh(gates * gate_scale)            # ONE 4H-lane EUP push
            i = 0.5 * (t[:, 0 * H:1 * H] + 1.0)
            f = 0.5 * (t[:, 1 * H:2 * H] + 1.0)
            o = 0.5 * (t[:, 2 * H:3 * H] + 1.0)
            g = t[:, 3 * H:4 * H]
            c_new = f * c + i * g
            return o * jnp.tanh(c_new), c_new

        # Hoisted layer-1 input projection for all T steps (one MXU matmul off the
        # serial critical path; layer-1 bias folded in once).
        x = x_ref[...].reshape(T * BB, I).astype(bf16)
        xg1 = jnp.dot(x, wih1_ref[...], preferred_element_type=f32) + b1_ref[...]

        w_big = wbig_ref[...]                                   # (2H, 8H) bf16
        b2 = jnp.broadcast_to(b2_ref[...], (BB, GH))            # hoisted broadcast

        h1 = jnp.zeros((BB, H), f32)
        c1 = jnp.zeros((BB, H), f32)
        h2 = jnp.zeros((BB, H), f32)
        c2 = jnp.zeros((BB, H), f32)
        outs2 = []

        # Wave 0: layer-1 step 0 only (h1 == 0, so the recurrent term vanishes).
        h1, c1 = lstm_update(xg1[0:BB, :], c1)

        # Waves 1..T-1: layer-1 step w + layer-2 step w-1 from ONE fused matmul.
        for w in range(1, T):
            lhs = jnp.concatenate([h1, h2], axis=1).astype(bf16)          # (BB, 2H)
            rec = jnp.dot(lhs, w_big, preferred_element_type=f32)         # (BB, 8H)
            h1, c1 = lstm_update(rec[:, :GH] + xg1[w * BB:(w + 1) * BB, :], c1)
            h2, c2 = lstm_update(rec[:, GH:] + b2, c2)
            outs2.append(h2)

        # Final wave: layer-2 step T-1 only (right block column of w_big).
        lhs = jnp.concatenate([h1, h2], axis=1).astype(bf16)
        g2 = jnp.dot(lhs, w_big[:, GH:], preferred_element_type=f32) + b2
        h2, c2 = lstm_update(g2, c2)
        outs2.append(h2)

        # FC head on the time-major (T*BB, H) vreg stack; lane-dense 128-wide store.
        h_tm = jnp.concatenate(outs2, axis=0).astype(bf16)                # (T*BB, H)
        logits = jnp.dot(h_tm, wfc_ref[...], preferred_element_type=f32) + bfc_ref[...]
        out_ref[...] = logits.reshape(T, BB, O_pad)

    return kernel


# ------------------------------ Module wrapper ---------------------------------

def _round_up(n, m):
    return ((n + m - 1) // m) * m


def _reorder_gate_cols(a, H):
    """PyTorch gate column order [i, f, g, o] -> kernel order [i, f, o, g]."""
    return jnp.concatenate(
        [a[:, :2 * H], a[:, 3 * H:4 * H], a[:, 2 * H:3 * H]], axis=1)


def star_trek_lstm_forward(x, y, params):
    """Dense equivalent of StarTrekLSTM.forward (eval mode, equal-length seqs).

    x: (T, B, input_size) one-hot, time-major.
    y: (B, T) int32 targets (already padded).
    Returns (logits (B*T, output_size), y flattened (B*T,)).
    """
    T, B, I = x.shape
    assert len(params["lstm"]) == 2, "wavefront kernel is specialized to n_layers=2"
    H = params["lstm"][0]["w_hh_t"].shape[0]
    O = params["w_fc_t"].shape[1]

    BB = 8                                    # batch block = sublane tile
    B_pad = max(BB, _round_up(B, BB))
    if B_pad != B:
        x = jnp.pad(x, ((0, 0), (0, B_pad - B), (0, 0)))
    O_pad = max(128, _round_up(O, 128))       # lane-dense FC output

    l1, l2 = params["lstm"]
    w_ih1 = _reorder_gate_cols(l1["w_ih_t"], H).astype(jnp.bfloat16)     # (I, 4H)
    b1 = _reorder_gate_cols(l1["b"], H)                                  # (1, 4H) f32
    w_hh1 = _reorder_gate_cols(l1["w_hh_t"], H)
    w_ih2 = _reorder_gate_cols(l2["w_ih_t"], H)
    w_hh2 = _reorder_gate_cols(l2["w_hh_t"], H)
    b2 = _reorder_gate_cols(l2["b"], H)                                  # (1, 4H) f32
    # Block-structured fused recurrent RHS: [[w_hh1, w_ih2], [0, w_hh2]]  (2H, 8H).
    w_big = jnp.concatenate(
        [jnp.concatenate([w_hh1, w_ih2], axis=1),
         jnp.concatenate([jnp.zeros((H, 4 * H), jnp.float32), w_hh2], axis=1)],
        axis=0).astype(jnp.bfloat16)
    w_fc = jnp.pad(params["w_fc_t"], ((0, 0), (0, O_pad - O))).astype(jnp.bfloat16)
    b_fc = jnp.pad(params["b_fc"], ((0, 0), (0, O_pad - O)))             # (1, Opad)

    n_blk = B_pad // BB
    flops = n_blk * (2 * T * BB * I * 4 * H            # hoisted input projection
                     + (T - 1) * 2 * BB * 2 * H * 8 * H  # fused waves
                     + 2 * BB * 2 * H * 4 * H            # final wave
                     + 2 * T * BB * H * O_pad)           # FC head
    transcendentals = n_blk * 2 * T * BB * (4 * H + H)
    bytes_accessed = (T * B_pad * I * 4 + T * B_pad * O_pad * 4
                      + (w_ih1.size + w_big.size + w_fc.size) * 2
                      + (b1.size + b2.size + b_fc.size) * 4)

    kernel = make_fused_kernel(T, BB, I, H, O_pad)
    out = pl.pallas_call(
        kernel,
        out_shape=jax.ShapeDtypeStruct((T, B_pad, O_pad), jnp.float32),
        grid=(n_blk,),
        in_specs=[
            pl.BlockSpec((T, BB, I), lambda j: (0, j, 0)),      # x (batch-blocked)
            pl.BlockSpec((I, 4 * H), lambda j: (0, 0)),         # w_ih1
            pl.BlockSpec((1, 4 * H), lambda j: (0, 0)),         # b1
            pl.BlockSpec((2 * H, 8 * H), lambda j: (0, 0)),     # w_big
            pl.BlockSpec((1, 4 * H), lambda j: (0, 0)),         # b2
            pl.BlockSpec((H, O_pad), lambda j: (0, 0)),         # w_fc (padded)
            pl.BlockSpec((1, O_pad), lambda j: (0, 0)),         # b_fc (padded)
        ],
        out_specs=pl.BlockSpec((T, BB, O_pad), lambda j: (0, j, 0)),
        compiler_params=pltpu.CompilerParams(
            dimension_semantics=("parallel",)),                 # v7x: 2 TCs at real batch
        cost_estimate=pl.CostEstimate(
            flops=int(flops), transcendentals=int(transcendentals),
            bytes_accessed=int(bytes_accessed)),
    )(x, w_ih1, b1, w_big, b2, w_fc, b_fc)

    # Kernel writes time-major (T, B_pad, O_pad); produce the
    # pad_packed_sequence(batch_first=True).view(-1, H) row order (b*T + t) and drop
    # the batch / lane padding here (free layout plumbing handled by XLA).
    logits = out[:, :B, :O].transpose(1, 0, 2).reshape(B * T, O)
    return logits, y.reshape(-1)


# ---------------------------- Deterministic params ------------------------------

def init_params(key, input_size, hidden_size, output_size, n_layers):
    params = {"lstm": []}
    scale = 1.0 / jnp.sqrt(jnp.float32(hidden_size))
    k = key
    for layer in range(n_layers):
        in_dim = input_size if layer == 0 else hidden_size
        k, k1, k2, k3, k4 = jax.random.split(k, 5)
        w_ih = jax.random.uniform(k1, (4 * hidden_size, in_dim),
                                  minval=-scale, maxval=scale, dtype=jnp.float32)
        w_hh = jax.random.uniform(k2, (4 * hidden_size, hidden_size),
                                  minval=-scale, maxval=scale, dtype=jnp.float32)
        b_ih = jax.random.uniform(k3, (4 * hidden_size,),
                                  minval=-scale, maxval=scale, dtype=jnp.float32)
        b_hh = jax.random.uniform(k4, (4 * hidden_size,),
                                  minval=-scale, maxval=scale, dtype=jnp.float32)
        params["lstm"].append({
            "w_ih_t": w_ih.T,                        # (I, 4H), PyTorch gate order
            "w_hh_t": w_hh.T,                        # (H, 4H)
            "b": (b_ih + b_hh).reshape(1, -1),       # (1, 4H)
        })
    k, k1, k2 = jax.random.split(k, 3)
    w_fc = jax.random.uniform(k1, (output_size, hidden_size),
                              minval=-scale, maxval=scale, dtype=jnp.float32)
    b_fc = jax.random.uniform(k2, (output_size,),
                              minval=-scale, maxval=scale, dtype=jnp.float32)
    params["w_fc_t"] = w_fc.T                        # (H, O)
    params["b_fc"] = b_fc.reshape(1, -1)             # (1, O)
    return params


# -------------------------------- JAX reference ---------------------------------

def reference_forward(x, y, params):
    h = x
    for layer in params["lstm"]:
        w_ih_t, w_hh_t, b = layer["w_ih_t"], layer["w_hh_t"], layer["b"]
        H = w_hh_t.shape[0]
        B = h.shape[1]

        def step(carry, x_t):
            h_prev, c_prev = carry
            gates = x_t @ w_ih_t + h_prev @ w_hh_t + b
            i = jax.nn.sigmoid(gates[:, 0 * H:1 * H])
            f = jax.nn.sigmoid(gates[:, 1 * H:2 * H])
            g = jnp.tanh(gates[:, 2 * H:3 * H])
            o = jax.nn.sigmoid(gates[:, 3 * H:4 * H])
            c_new = f * c_prev + i * g
            h_new = o * jnp.tanh(c_new)
            return (h_new, c_new), h_new

        init = (jnp.zeros((B, H), jnp.float32), jnp.zeros((B, H), jnp.float32))
        _, h = jax.lax.scan(step, init, h)
    T, B, H = h.shape
    h_flat = jnp.transpose(h, (1, 0, 2)).reshape(B * T, H)
    return h_flat @ params["w_fc_t"] + params["b_fc"], y.reshape(-1)


# ------------------------------------ main ---------------------------------------

if __name__ == "__main__":
    input_size, hidden_size, output_size, n_layers = 32, 32, 32, 2
    T, B = 8, 2

    key = jax.random.PRNGKey(0)
    kp, kx, ky = jax.random.split(key, 3)

    params = init_params(kp, input_size, hidden_size, output_size, n_layers)

    # One-hot "character embedding" input, time-major (T, B, input_size).
    char_ids = jax.random.randint(kx, (T, B), 0, input_size)
    x = jax.nn.one_hot(char_ids, input_size, dtype=jnp.float32)

    # Padded targets (B, T) — what character_embed would produce (no -1 padding here).
    y = jax.random.randint(ky, (B, T), 0, output_size).astype(jnp.int32)

    fwd = jax.jit(star_trek_lstm_forward)
    logits, y_flat = fwd(x, y, params)
    logits = jax.block_until_ready(logits)
    y_flat = jax.block_until_ready(y_flat)

    ref_logits, ref_y = reference_forward(x, y, params)
    assert logits.shape == (B * T, output_size)
    assert y_flat.shape == (B * T,)
    # bf16 matmul operands (f32 accumulation) -> tolerance loosened vs the f32 reference.
    assert jnp.allclose(logits, ref_logits, rtol=5e-2, atol=5e-2)
    assert jnp.array_equal(y_flat, ref_y)

    print("KERNEL_OK")
</pallas_src>

<mosaic_0001>
module attributes {stable_mosaic.version = 11 : i64} {
  func.func @kernel(%arg0: i32, %arg1: memref<8x8x32xf32, #tpu.memory_space<vmem>>, %arg2: memref<32x128xbf16, #tpu.memory_space<vmem>>, %arg3: memref<1x128xf32, #tpu.memory_space<vmem>>, %arg4: memref<64x256xbf16, #tpu.memory_space<vmem>>, %arg5: memref<1x128xf32, #tpu.memory_space<vmem>>, %arg6: memref<32x128xbf16, #tpu.memory_space<vmem>>, %arg7: memref<1x128xf32, #tpu.memory_space<vmem>>, %arg8: memref<8x8x128xf32, #tpu.memory_space<vmem>>) attributes {dimension_semantics = [#tpu.dimension_semantics<parallel>], iteration_bounds = array<i64: 1>, scalar_prefetch = 0 : i64, scratch_operands = 0 : i64, tpu.core_type = #tpu.core_type<tc>, window_params = [{transform_indices = @transform_0, window_bounds = array<i64: 8, 8, 32>}, {pipeline_mode = #tpu.pipeline_mode<synchronous>, transform_indices = @transform_1, window_bounds = array<i64: 32, 128>}, {pipeline_mode = #tpu.pipeline_mode<synchronous>, transform_indices = @transform_2, window_bounds = array<i64: 1, 128>}, {pipeline_mode = #tpu.pipeline_mode<synchronous>, transform_indices = @transform_3, window_bounds = array<i64: 64, 256>}, {pipeline_mode = #tpu.pipeline_mode<synchronous>, transform_indices = @transform_4, window_bounds = array<i64: 1, 128>}, {pipeline_mode = #tpu.pipeline_mode<synchronous>, transform_indices = @transform_5, window_bounds = array<i64: 32, 128>}, {pipeline_mode = #tpu.pipeline_mode<synchronous>, transform_indices = @transform_6, window_bounds = array<i64: 1, 128>}, {transform_indices = @transform_7, window_bounds = array<i64: 8, 8, 128>}]} {
    %0 = tpu.iota {dimensions = array<i32: 1>} : vector<8x128xi32>
    %c96_i32 = arith.constant 96 : i32
    %1 = vector.broadcast %c96_i32 : i32 to vector<8x128xi32>
    %2 = arith.cmpi slt, %0, %1 : vector<8x128xi32>
    %cst = arith.constant 5.000000e-01 : f32
    %cst_0 = arith.constant 1.000000e+00 : f32
    %3 = vector.broadcast %cst : f32 to vector<8x128xf32>
    %4 = vector.broadcast %cst_0 : f32 to vector<8x128xf32>
    %5 = arith.select %2, %3, %4 : vector<8x128xi1>, vector<8x128xf32>
    %c0 = arith.constant 0 : index
    %c0_1 = arith.constant 0 : index
    %c0_2 = arith.constant 0 : index
    %6 = vector.load %arg1[%c0, %c0_1, %c0_2] : memref<8x8x32xf32, #tpu.memory_space<vmem>>, vector<8x8x32xf32>
    %7 = vector.shape_cast %6 : vector<8x8x32xf32> to vector<64x32xf32>
    %8 = arith.truncf %7 : vector<64x32xf32> to vector<64x32xbf16>
    %c0_3 = arith.constant 0 : index
    %c0_4 = arith.constant 0 : index
    %9 = vector.load %arg2[%c0_3, %c0_4] : memref<32x128xbf16, #tpu.memory_space<vmem>>, vector<32x128xbf16>
    %cst_5 = arith.constant dense<0.000000e+00> : vector<64x128xf32>
    %10 = tpu.matmul %8, %9, %cst_5 {dimension_numbers = #tpu.dot_dimension_numbers<[1], [0], [0], [1], [0, 0, 1, 1], [], []>} : vector<64x32xbf16>, vector<32x128xbf16>, vector<64x128xf32> -> vector<64x128xf32>
    %c0_6 = arith.constant 0 : index
    %c0_7 = arith.constant 0 : index
    %11 = vector.load %arg3[%c0_6, %c0_7] : memref<1x128xf32, #tpu.memory_space<vmem>>, vector<1x128xf32>
    %12 = vector.broadcast %11 : vector<1x128xf32> to vector<64x128xf32>
    %13 = arith.addf %10, %12 : vector<64x128xf32>
    %c0_8 = arith.constant 0 : index
    %c0_9 = arith.constant 0 : index
    %14 = vector.load %arg4[%c0_8, %c0_9] : memref<64x256xbf16, #tpu.memory_space<vmem>>, vector<64x256xbf16>
    %c0_10 = arith.constant 0 : index
    %c0_11 = arith.constant 0 : index
    %15 = vector.load %arg5[%c0_10, %c0_11] : memref<1x128xf32, #tpu.memory_space<vmem>>, vector<1x128xf32>
    %16 = vector.shape_cast %15 : vector<1x128xf32> to vector<1x128xf32>
    %17 = vector.broadcast %16 : vector<1x128xf32> to vector<8x128xf32>
    %cst_12 = arith.constant 0.000000e+00 : f32
    %18 = vector.broadcast %cst_12 : f32 to vector<8x32xf32>
    %cst_13 = arith.constant 0.000000e+00 : f32
    %19 = vector.broadcast %cst_13 : f32 to vector<8x32xf32>
    %cst_14 = arith.constant 0.000000e+00 : f32
    %20 = vector.broadcast %cst_14 : f32 to vector<8x32xf32>
    %21 = vector.extract_strided_slice %13 {offsets = [0, 0], sizes = [8, 128], strides = [1, 1]} : vector<64x128xf32> to vector<8x128xf32>
    %22 = arith.mulf %21, %5 : vector<8x128xf32>
    %23 = math.tanh %22 : vector<8x128xf32>
    %24 = vector.extract_strided_slice %23 {offsets = [0, 0], sizes = [8, 32], strides = [1, 1]} : vector<8x128xf32> to vector<8x32xf32>
    %cst_15 = arith.constant 1.000000e+00 : f32
    %25 = vector.broadcast %cst_15 : f32 to vector<8x32xf32>
    %26 = arith.addf %24, %25 : vector<8x32xf32>
    %cst_16 = arith.constant 5.000000e-01 : f32
    %27 = vector.broadcast %cst_16 : f32 to vector<8x32xf32>
    %28 = arith.mulf %27, %26 : vector<8x32xf32>
    %29 = vector.extract_strided_slice %23 {offsets = [0, 32], sizes = [8, 32], strides = [1, 1]} : vector<8x128xf32> to vector<8x32xf32>
    %cst_17 = arith.constant 1.000000e+00 : f32
    %30 = vector.broadcast %cst_17 : f32 to vector<8x32xf32>
    %31 = arith.addf %29, %30 : vector<8x32xf32>
    %cst_18 = arith.constant 5.000000e-01 : f32
    %32 = vector.broadcast %cst_18 : f32 to vector<8x32xf32>
    %33 = arith.mulf %32, %31 : vector<8x32xf32>
    %34 = vector.extract_strided_slice %23 {offsets = [0, 64], sizes = [8, 32], strides = [1, 1]} : vector<8x128xf32> to vector<8x32xf32>
    %cst_19 = arith.constant 1.000000e+00 : f32
    %35 = vector.broadcast %cst_19 : f32 to vector<8x32xf32>
    %36 = arith.addf %34, %35 : vector<8x32xf32>
    %cst_20 = arith.constant 5.000000e-01 : f32
    %37 = vector.broadcast %cst_20 : f32 to vector<8x32xf32>
    %38 = arith.mulf %37, %36 : vector<8x32xf32>
    %39 = vector.extract_strided_slice %23 {offsets = [0, 96], sizes = [8, 32], strides = [1, 1]} : vector<8x128xf32> to vector<8x32xf32>
    %40 = arith.mulf %33, %18 : vector<8x32xf32>
    %41 = arith.mulf %28, %39 : vector<8x32xf32>
    %42 = arith.addf %40, %41 : vector<8x32xf32>
    %43 = math.tanh %42 : vector<8x32xf32>
    %44 = arith.mulf %38, %43 : vector<8x32xf32>
    %45 = tpu.concatenate %44, %19 in 1 : vector<8x32xf32>, vector<8x32xf32> -> vector<8x64xf32>
    %46 = arith.truncf %45 : vector<8x64xf32> to vector<8x64xbf16>
    %cst_21 = arith.constant dense<0.000000e+00> : vector<8x256xf32>
    %47 = tpu.matmul %46, %14, %cst_21 {dimension_numbers = #tpu.dot_dimension_numbers<[1], [0], [0], [1], [0, 0, 1, 1], [], []>} : vector<8x64xbf16>, vector<64x256xbf16>, vector<8x256xf32> -> vector<8x256xf32>
    %48 = vector.extract_strided_slice %47 {offsets = [0, 0], sizes = [8, 128], strides = [1, 1]} : vector<8x256xf32> to vector<8x128xf32>
    %49 = vector.extract_strided_slice %13 {offsets = [8, 0], sizes = [8, 128], strides = [1, 1]} : vector<64x128xf32> to vector<8x128xf32>
    %50 = arith.addf %48, %49 : vector<8x128xf32>
    %51 = arith.mulf %50, %5 : vector<8x128xf32>
    %52 = math.tanh %51 : vector<8x128xf32>
    %53 = vector.extract_strided_slice %52 {offsets = [0, 0], sizes = [8, 32], strides = [1, 1]} : vector<8x128xf32> to vector<8x32xf32>
    %cst_22 = arith.constant 1.000000e+00 : f32
    %54 = vector.broadcast %cst_22 : f32 to vector<8x32xf32>
    %55 = arith.addf %53, %54 : vector<8x32xf32>
    %cst_23 = arith.constant 5.000000e-01 : f32
    %56 = vector.broadcast %cst_23 : f32 to vector<8x32xf32>
    %57 = arith.mulf %56, %55 : vector<8x32xf32>
    %58 = vector.extract_strided_slice %52 {offsets = [0, 32], sizes = [8, 32], strides = [1, 1]} : vector<8x128xf32> to vector<8x32xf32>
    %cst_24 = arith.constant 1.000000e+00 : f32
    %59 = vector.broadcast %cst_24 : f32 to vector<8x32xf32>
    %60 = arith.addf %58, %59 : vector<8x32xf32>
    %cst_25 = arith.constant 5.000000e-01 : f32
    %61 = vector.broadcast %cst_25 : f32 to vector<8x32xf32>
    %62 = arith.mulf %61, %60 : vector<8x32xf32>
    %63 = vector.extract_strided_slice %52 {offsets = [0, 64], sizes = [8, 32], strides = [1, 1]} : vector<8x128xf32> to vector<8x32xf32>
    %cst_26 = arith.constant 1.000000e+00 : f32
    %64 = vector.broadcast %cst_26 : f32 to vector<8x32xf32>
    %65 = arith.addf %63, %64 : vector<8x32xf32>
    %cst_27 = arith.constant 5.000000e-01 : f32
    %66 = vector.broadcast %cst_27 : f32 to vector<8x32xf32>
    %67 = arith.mulf %66, %65 : vector<8x32xf32>
    %68 = vector.extract_strided_slice %52 {offsets = [0, 96], sizes = [8, 32], strides = [1, 1]} : vector<8x128xf32> to vector<8x32xf32>
    %69 = arith.mulf %62, %42 : vector<8x32xf32>
    %70 = arith.mulf %57, %68 : vector<8x32xf32>
    %71 = arith.addf %69, %70 : vector<8x32xf32>
    %72 = math.tanh %71 : vector<8x32xf32>
    %73 = arith.mulf %67, %72 : vector<8x32xf32>
    %74 = vector.extract_strided_slice %47 {offsets = [0, 128], sizes = [8, 128], strides = [1, 1]} : vector<8x256xf32> to vector<8x128xf32>
    %75 = arith.addf %74, %17 : vector<8x128xf32>
    %76 = arith.mulf %75, %5 : vector<8x128xf32>
    %77 = math.tanh %76 : vector<8x128xf32>
    %78 = vector.extract_strided_slice %77 {offsets = [0, 0], sizes = [8, 32], strides = [1, 1]} : vector<8x128xf32> to vector<8x32xf32>
    %cst_28 = arith.constant 1.000000e+00 : f32
    %79 = vector.broadcast %cst_28 : f32 to vector<8x32xf32>
    %80 = arith.addf %78, %79 : vector<8x32xf32>
    %cst_29 = arith.constant 5.000000e-01 : f32
    %81 = vector.broadcast %cst_29 : f32 to vector<8x32xf32>
    %82 = arith.mulf %81, %80 : vector<8x32xf32>
    %83 = vector.extract_strided_slice %77 {offsets = [0, 32], sizes = [8, 32], strides = [1, 1]} : vector<8x128xf32> to vector<8x32xf32>
    %cst_30 = arith.constant 1.000000e+00 : f32
    %84 = vector.broadcast %cst_30 : f32 to vector<8x32xf32>
    %85 = arith.addf %83, %84 : vector<8x32xf32>
    %cst_31 = arith.constant 5.000000e-01 : f32
    %86 = vector.broadcast %cst_31 : f32 to vector<8x32xf32>
    %87 = arith.mulf %86, %85 : vector<8x32xf32>
    %88 = vector.extract_strided_slice %77 {offsets = [0, 64], sizes = [8, 32], strides = [1, 1]} : vector<8x128xf32> to vector<8x32xf32>
    %cst_32 = arith.constant 1.000000e+00 : f32
    %89 = vector.broadcast %cst_32 : f32 to vector<8x32xf32>
    %90 = arith.addf %88, %89 : vector<8x32xf32>
    %cst_33 = arith.constant 5.000000e-01 : f32
    %91 = vector.broadcast %cst_33 : f32 to vector<8x32xf32>
    %92 = arith.mulf %91, %90 : vector<8x32xf32>
    %93 = vector.extract_strided_slice %77 {offsets = [0, 96], sizes = [8, 32], strides = [1, 1]} : vector<8x128xf32> to vector<8x32xf32>
    %94 = arith.mulf %87, %20 : vector<8x32xf32>
    %95 = arith.mulf %82, %93 : vector<8x32xf32>
    %96 = arith.addf %94, %95 : vector<8x32xf32>
    %97 = math.tanh %96 : vector<8x32xf32>
    %98 = arith.mulf %92, %97 : vector<8x32xf32>
    %99 = tpu.concatenate %73, %98 in 1 : vector<8x32xf32>, vector<8x32xf32> -> vector<8x64xf32>
    %100 = arith.truncf %99 : vector<8x64xf32> to vector<8x64xbf16>
    %cst_34 = arith.constant dense<0.000000e+00> : vector<8x256xf32>
    %101 = tpu.matmul %100, %14, %cst_34 {dimension_numbers = #tpu.dot_dimension_numbers<[1], [0], [0], [1], [0, 0, 1, 1], [], []>} : vector<8x64xbf16>, vector<64x256xbf16>, vector<8x256xf32> -> vector<8x256xf32>
    %102 = vector.extract_strided_slice %101 {offsets = [0, 0], sizes = [8, 128], strides = [1, 1]} : vector<8x256xf32> to vector<8x128xf32>
    %103 = vector.extract_strided_slice %13 {offsets = [16, 0], sizes = [8, 128], strides = [1, 1]} : vector<64x128xf32> to vector<8x128xf32>
    %104 = arith.addf %102, %103 : vector<8x128xf32>
    %105 = arith.mulf %104, %5 : vector<8x128xf32>
    %106 = math.tanh %105 : vector<8x128xf32>
    %107 = vector.extract_strided_slice %106 {offsets = [0, 0], sizes = [8, 32], strides = [1, 1]} : vector<8x128xf32> to vector<8x32xf32>
    %cst_35 = arith.constant 1.000000e+00 : f32
    %108 = vector.broadcast %cst_35 : f32 to vector<8x32xf32>
    %109 = arith.addf %107, %108 : vector<8x32xf32>
    %cst_36 = arith.constant 5.000000e-01 : f32
    %110 = vector.broadcast %cst_36 : f32 to vector<8x32xf32>
    %111 = arith.mulf %110, %109 : vector<8x32xf32>
    %112 = vector.extract_strided_slice %106 {offsets = [0, 32], sizes = [8, 32], strides = [1, 1]} : vector<8x128xf32> to vector<8x32xf32>
    %cst_37 = arith.constant 1.000000e+00 : f32
    %113 = vector.broadcast %cst_37 : f32 to vector<8x32xf32>
    %114 = arith.addf %112, %113 : vector<8x32xf32>
    %cst_38 = arith.constant 5.000000e-01 : f32
    %115 = vector.broadcast %cst_38 : f32 to vector<8x32xf32>
    %116 = arith.mulf %115, %114 : vector<8x32xf32>
    %117 = vector.extract_strided_slice %106 {offsets = [0, 64], sizes = [8, 32], strides = [1, 1]} : vector<8x128xf32> to vector<8x32xf32>
    %cst_39 = arith.constant 1.000000e+00 : f32
    %118 = vector.broadcast %cst_39 : f32 to vector<8x32xf32>
    %119 = arith.addf %117, %118 : vector<8x32xf32>
    %cst_40 = arith.constant 5.000000e-01 : f32
    %120 = vector.broadcast %cst_40 : f32 to vector<8x32xf32>
    %121 = arith.mulf %120, %119 : vector<8x32xf32>
    %122 = vector.extract_strided_slice %106 {offsets = [0, 96], sizes = [8, 32], strides = [1, 1]} : vector<8x128xf32> to vector<8x32xf32>
    %123 = arith.mulf %116, %71 : vector<8x32xf32>
    %124 = arith.mulf %111, %122 : vector<8x32xf32>
    %125 = arith.addf %123, %124 : vector<8x32xf32>
    %126 = math.tanh %125 : vector<8x32xf32>
    %127 = arith.mulf %121, %126 : vector<8x32xf32>
    %128 = vector.extract_strided_slice %101 {offsets = [0, 128], sizes = [8, 128], strides = [1, 1]} : vector<8x256xf32> to vector<8x128xf32>
    %129 = arith.addf %128, %17 : vector<8x128xf32>
    %130 = arith.mulf %129, %5 : vector<8x128xf32>
    %131 = math.tanh %130 : vector<8x128xf32>
    %132 = vector.extract_strided_slice %131 {offsets = [0, 0], sizes = [8, 32], strides = [1, 1]} : vector<8x128xf32> to vector<8x32xf32>
    %cst_41 = arith.constant 1.000000e+00 : f32
    %133 = vector.broadcast %cst_41 : f32 to vector<8x32xf32>
    %134 = arith.addf %132, %133 : vector<8x32xf32>
    %cst_42 = arith.constant 5.000000e-01 : f32
    %135 = vector.broadcast %cst_42 : f32 to vector<8x32xf32>
    %136 = arith.mulf %135, %134 : vector<8x32xf32>
    %137 = vector.extract_strided_slice %131 {offsets = [0, 32], sizes = [8, 32], strides = [1, 1]} : vector<8x128xf32> to vector<8x32xf32>
    %cst_43 = arith.constant 1.000000e+00 : f32
    %138 = vector.broadcast %cst_43 : f32 to vector<8x32xf32>
    %139 = arith.addf %137, %138 : vector<8x32xf32>
    %cst_44 = arith.constant 5.000000e-01 : f32
    %140 = vector.broadcast %cst_44 : f32 to vector<8x32xf32>
    %141 = arith.mulf %140, %139 : vector<8x32xf32>
    %142 = vector.extract_strided_slice %131 {offsets = [0, 64], sizes = [8, 32], strides = [1, 1]} : vector<8x128xf32> to vector<8x32xf32>
    %cst_45 = arith.constant 1.000000e+00 : f32
    %143 = vector.broadcast %cst_45 : f32 to vector<8x32xf32>
    %144 = arith.addf %142, %143 : vector<8x32xf32>
    %cst_46 = arith.constant 5.000000e-01 : f32
    %145 = vector.broadcast %cst_46 : f32 to vector<8x32xf32>
    %146 = arith.mulf %145, %144 : vector<8x32xf32>
    %147 = vector.extract_strided_slice %131 {offsets = [0, 96], sizes = [8, 32], strides = [1, 1]} : vector<8x128xf32> to vector<8x32xf32>
    %148 = arith.mulf %141, %96 : vector<8x32xf32>
    %149 = arith.mulf %136, %147 : vector<8x32xf32>
    %150 = arith.addf %148, %149 : vector<8x32xf32>
    %151 = math.tanh %150 : vector<8x32xf32>
    %152 = arith.mulf %146, %151 : vector<8x32xf32>
    %153 = tpu.concatenate %127, %152 in 1 : vector<8x32xf32>, vector<8x32xf32> -> vector<8x64xf32>
    %154 = arith.truncf %153 : vector<8x64xf32> to vector<8x64xbf16>
    %cst_47 = arith.constant dense<0.000000e+00> : vector<8x256xf32>
    %155 = tpu.matmul %154, %14, %cst_47 {dimension_numbers = #tpu.dot_dimension_numbers<[1], [0], [0], [1], [0, 0, 1, 1], [], []>} : vector<8x64xbf16>, vector<64x256xbf16>, vector<8x256xf32> -> vector<8x256xf32>
    %156 = vector.extract_strided_slice %155 {offsets = [0, 0], sizes = [8, 128], strides = [1, 1]} : vector<8x256xf32> to vector<8x128xf32>
    %157 = vector.extract_strided_slice %13 {offsets = [24, 0], sizes = [8, 128], strides = [1, 1]} : vector<64x128xf32> to vector<8x128xf32>
    %158 = arith.addf %156, %157 : vector<8x128xf32>
    %159 = arith.mulf %158, %5 : vector<8x128xf32>
    %160 = math.tanh %159 : vector<8x128xf32>
    %161 = vector.extract_strided_slice %160 {offsets = [0, 0], sizes = [8, 32], strides = [1, 1]} : vector<8x128xf32> to vector<8x32xf32>
    %cst_48 = arith.constant 1.000000e+00 : f32
    %162 = vector.broadcast %cst_48 : f32 to vector<8x32xf32>
    %163 = arith.addf %161, %162 : vector<8x32xf32>
    %cst_49 = arith.constant 5.000000e-01 : f32
    %164 = vector.broadcast %cst_49 : f32 to vector<8x32xf32>
    %165 = arith.mulf %164, %163 : vector<8x32xf32>
    %166 = vector.extract_strided_slice %160 {offsets = [0, 32], sizes = [8, 32], strides = [1, 1]} : vector<8x128xf32> to vector<8x32xf32>
    %cst_50 = arith.constant 1.000000e+00 : f32
    %167 = vector.broadcast %cst_50 : f32 to vector<8x32xf32>
    %168 = arith.addf %166, %167 : vector<8x32xf32>
    %cst_51 = arith.constant 5.000000e-01 : f32
    %169 = vector.broadcast %cst_51 : f32 to vector<8x32xf32>
    %170 = arith.mulf %169, %168 : vector<8x32xf32>
    %171 = vector.extract_strided_slice %160 {offsets = [0, 64], sizes = [8, 32], strides = [1, 1]} : vector<8x128xf32> to vector<8x32xf32>
    %cst_52 = arith.constant 1.000000e+00 : f32
    %172 = vector.broadcast %cst_52 : f32 to vector<8x32xf32>
    %173 = arith.addf %171, %172 : vector<8x32xf32>
    %cst_53 = arith.constant 5.000000e-01 : f32
    %174 = vector.broadcast %cst_53 : f32 to vector<8x32xf32>
    %175 = arith.mulf %174, %173 : vector<8x32xf32>
    %176 = vector.extract_strided_slice %160 {offsets = [0, 96], sizes = [8, 32], strides = [1, 1]} : vector<8x128xf32> to vector<8x32xf32>
    %177 = arith.mulf %170, %125 : vector<8x32xf32>
    %178 = arith.mulf %165, %176 : vector<8x32xf32>
    %179 = arith.addf %177, %178 : vector<8x32xf32>
    %180 = math.tanh %179 : vector<8x32xf32>
    %181 = arith.mulf %175, %180 : vector<8x32xf32>
    %182 = vector.extract_strided_slice %155 {offsets = [0, 128], sizes = [8, 128], strides = [1, 1]} : vector<8x256xf32> to vector<8x128xf32>
    %183 = arith.addf %182, %17 : vector<8x128xf32>
    %184 = arith.mulf %183, %5 : vector<8x128xf32>
    %185 = math.tanh %184 : vector<8x128xf32>
    %186 = vector.extract_strided_slice %185 {offsets = [0, 0], sizes = [8, 32], strides = [1, 1]} : vector<8x128xf32> to vector<8x32xf32>
    %cst_54 = arith.constant 1.000000e+00 : f32
    %187 = vector.broadcast %cst_54 : f32 to vector<8x32xf32>
    %188 = arith.addf %186, %187 : vector<8x32xf32>
    %cst_55 = arith.constant 5.000000e-01 : f32
    %189 = vector.broadcast %cst_55 : f32 to vector<8x32xf32>
    %190 = arith.mulf %189, %188 : vector<8x32xf32>
    %191 = vector.extract_strided_slice %185 {offsets = [0, 32], sizes = [8, 32], strides = [1, 1]} : vector<8x128xf32> to vector<8x32xf32>
    %cst_56 = arith.constant 1.000000e+00 : f32
    %192 = vector.broadcast %cst_56 : f32 to vector<8x32xf32>
    %193 = arith.addf %191, %192 : vector<8x32xf32>
    %cst_57 = arith.constant 5.000000e-01 : f32
    %194 = vector.broadcast %cst_57 : f32 to vector<8x32xf32>
    %195 = arith.mulf %194, %193 : vector<8x32xf32>
    %196 = vector.extract_strided_slice %185 {offsets = [0, 64], sizes = [8, 32], strides = [1, 1]} : vector<8x128xf32> to vector<8x32xf32>
    %cst_58 = arith.constant 1.000000e+00 : f32
    %197 = vector.broadcast %cst_58 : f32 to vector<8x32xf32>
    %198 = arith.addf %196, %197 : vector<8x32xf32>
    %cst_59 = arith.constant 5.000000e-01 : f32
    %199 = vector.broadcast %cst_59 : f32 to vector<8x32xf32>
    %200 = arith.mulf %199, %198 : vector<8x32xf32>
    %201 = vector.extract_strided_slice %185 {offsets = [0, 96], sizes = [8, 32], strides = [1, 1]} : vector<8x128xf32> to vector<8x32xf32>
    %202 = arith.mulf %195, %150 : vector<8x32xf32>
    %203 = arith.mulf %190, %201 : vector<8x32xf32>
    %204 = arith.addf %202, %203 : vector<8x32xf32>
    %205 = math.tanh %204 : vector<8x32xf32>
    %206 = arith.mulf %200, %205 : vector<8x32xf32>
    %207 = tpu.concatenate %181, %206 in 1 : vector<8x32xf32>, vector<8x32xf32> -> vector<8x64xf32>
    %208 = arith.truncf %207 : vector<8x64xf32> to vector<8x64xbf16>
    %cst_60 = arith.constant dense<0.000000e+00> : vector<8x256xf32>
    %209 = tpu.matmul %208, %14, %cst_60 {dimension_numbers = #tpu.dot_dimension_numbers<[1], [0], [0], [1], [0, 0, 1, 1], [], []>} : vector<8x64xbf16>, vector<64x256xbf16>, vector<8x256xf32> -> vector<8x256xf32>
    %210 = vector.extract_strided_slice %209 {offsets = [0, 0], sizes = [8, 128], strides = [1, 1]} : vector<8x256xf32> to vector<8x128xf32>
    %211 = vector.extract_strided_slice %13 {offsets = [32, 0], sizes = [8, 128], strides = [1, 1]} : vector<64x128xf32> to vector<8x128xf32>
    %212 = arith.addf %210, %211 : vector<8x128xf32>
    %213 = arith.mulf %212, %5 : vector<8x128xf32>
    %214 = math.tanh %213 : vector<8x128xf32>
    %215 = vector.extract_strided_slice %214 {offsets = [0, 0], sizes = [8, 32], strides = [1, 1]} : vector<8x128xf32> to vector<8x32xf32>
    %cst_61 = arith.constant 1.000000e+00 : f32
    %216 = vector.broadcast %cst_61 : f32 to vector<8x32xf32>
    %217 = arith.addf %215, %216 : vector<8x32xf32>
    %cst_62 = arith.constant 5.000000e-01 : f32
    %218 = vector.broadcast %cst_62 : f32 to vector<8x32xf32>
    %219 = arith.mulf %218, %217 : vector<8x32xf32>
    %220 = vector.extract_strided_slice %214 {offsets = [0, 32], sizes = [8, 32], strides = [1, 1]} : vector<8x128xf32> to vector<8x32xf32>
    %cst_63 = arith.constant 1.000000e+00 : f32
    %221 = vector.broadcast %cst_63 : f32 to vector<8x32xf32>
    %222 = arith.addf %220, %221 : vector<8x32xf32>
    %cst_64 = arith.constant 5.000000e-01 : f32
    %223 = vector.broadcast %cst_64 : f32 to vector<8x32xf32>
    %224 = arith.mulf %223, %222 : vector<8x32xf32>
    %225 = vector.extract_strided_slice %214 {offsets = [0, 64], sizes = [8, 32], strides = [1, 1]} : vector<8x128xf32> to vector<8x32xf32>
    %cst_65 = arith.constant 1.000000e+00 : f32
    %226 = vector.broadcast %cst_65 : f32 to vector<8x32xf32>
    %227 = arith.addf %225, %226 : vector<8x32xf32>
    %cst_66 = arith.constant 5.000000e-01 : f32
    %228 = vector.broadcast %cst_66 : f32 to vector<8x32xf32>
    %229 = arith.mulf %228, %227 : vector<8x32xf32>
    %230 = vector.extract_strided_slice %214 {offsets = [0, 96], sizes = [8, 32], strides = [1, 1]} : vector<8x128xf32> to vector<8x32xf32>
    %231 = arith.mulf %224, %179 : vector<8x32xf32>
    %232 = arith.mulf %219, %230 : vector<8x32xf32>
    %233 = arith.addf %231, %232 : vector<8x32xf32>
    %234 = math.tanh %233 : vector<8x32xf32>
    %235 = arith.mulf %229, %234 : vector<8x32xf32>
    %236 = vector.extract_strided_slice %209 {offsets = [0, 128], sizes = [8, 128], strides = [1, 1]} : vector<8x256xf32> to vector<8x128xf32>
    %237 = arith.addf %236, %17 : vector<8x128xf32>
    %238 = arith.mulf %237, %5 : vector<8x128xf32>
    %239 = math.tanh %238 : vector<8x128xf32>
    %240 = vector.extract_strided_slice %239 {offsets = [0, 0], sizes = [8, 32], strides = [1, 1]} : vector<8x128xf32> to vector<8x32xf32>
    %cst_67 = arith.constant 1.000000e+00 : f32
    %241 = vector.broadcast %cst_67 : f32 to vector<8x32xf32>
    %242 = arith.addf %240, %241 : vector<8x32xf32>
    %cst_68 = arith.constant 5.000000e-01 : f32
    %243 = vector.broadcast %cst_68 : f32 to vector<8x32xf32>
    %244 = arith.mulf %243, %242 : vector<8x32xf32>
    %245 = vector.extract_strided_slice %239 {offsets = [0, 32], sizes = [8, 32], strides = [1, 1]} : vector<8x128xf32> to vector<8x32xf32>
    %cst_69 = arith.constant 1.000000e+00 : f32
    %246 = vector.broadcast %cst_69 : f32 to vector<8x32xf32>
    %247 = arith.addf %245, %246 : vector<8x32xf32>
    %cst_70 = arith.constant 5.000000e-01 : f32
    %248 = vector.broadcast %cst_70 : f32 to vector<8x32xf32>
    %249 = arith.mulf %248, %247 : vector<8x32xf32>
    %250 = vector.extract_strided_slice %239 {offsets = [0, 64], sizes = [8, 32], strides = [1, 1]} : vector<8x128xf32> to vector<8x32xf32>
    %cst_71 = arith.constant 1.000000e+00 : f32
    %251 = vector.broadcast %cst_71 : f32 to vector<8x32xf32>
    %252 = arith.addf %250, %251 : vector<8x32xf32>
    %cst_72 = arith.constant 5.000000e-01 : f32
    %253 = vector.broadcast %cst_72 : f32 to vector<8x32xf32>
    %254 = arith.mulf %253, %252 : vector<8x32xf32>
    %255 = vector.extract_strided_slice %239 {offsets = [0, 96], sizes = [8, 32], strides = [1, 1]} : vector<8x128xf32> to vector<8x32xf32>
    %256 = arith.mulf %249, %204 : vector<8x32xf32>
    %257 = arith.mulf %244, %255 : vector<8x32xf32>
    %258 = arith.addf %256, %257 : vector<8x32xf32>
    %259 = math.tanh %258 : vector<8x32xf32>
    %260 = arith.mulf %254, %259 : vector<8x32xf32>
    %261 = tpu.concatenate %235, %260 in 1 : vector<8x32xf32>, vector<8x32xf32> -> vector<8x64xf32>
    %262 = arith.truncf %261 : vector<8x64xf32> to vector<8x64xbf16>
    %cst_73 = arith.constant dense<0.000000e+00> : vector<8x256xf32>
    %263 = tpu.matmul %262, %14, %cst_73 {dimension_numbers = #tpu.dot_dimension_numbers<[1], [0], [0], [1], [0, 0, 1, 1], [], []>} : vector<8x64xbf16>, vector<64x256xbf16>, vector<8x256xf32> -> vector<8x256xf32>
    %264 = vector.extract_strided_slice %263 {offsets = [0, 0], sizes = [8, 128], strides = [1, 1]} : vector<8x256xf32> to vector<8x128xf32>
    %265 = vector.extract_strided_slice %13 {offsets = [40, 0], sizes = [8, 128], strides = [1, 1]} : vector<64x128xf32> to vector<8x128xf32>
    %266 = arith.addf %264, %265 : vector<8x128xf32>
    %267 = arith.mulf %266, %5 : vector<8x128xf32>
    %268 = math.tanh %267 : vector<8x128xf32>
    %269 = vector.extract_strided_slice %268 {offsets = [0, 0], sizes = [8, 32], strides = [1, 1]} : vector<8x128xf32> to vector<8x32xf32>
    %cst_74 = arith.constant 1.000000e+00 : f32
    %270 = vector.broadcast %cst_74 : f32 to vector<8x32xf32>
    %271 = arith.addf %269, %270 : vector<8x32xf32>
    %cst_75 = arith.constant 5.000000e-01 : f32
    %272 = vector.broadcast %cst_75 : f32 to vector<8x32xf32>
    %273 = arith.mulf %272, %271 : vector<8x32xf32>
    %274 = vector.extract_strided_slice %268 {offsets = [0, 32], sizes = [8, 32], strides = [1, 1]} : vector<8x128xf32> to vector<8x32xf32>
    %cst_76 = arith.constant 1.000000e+00 : f32
    %275 = vector.broadcast %cst_76 : f32 to vector<8x32xf32>
    %276 = arith.addf %274, %275 : vector<8x32xf32>
    %cst_77 = arith.constant 5.000000e-01 : f32
    %277 = vector.broadcast %cst_77 : f32 to vector<8x32xf32>
    %278 = arith.mulf %277, %276 : vector<8x32xf32>
    %279 = vector.extract_strided_slice %268 {offsets = [0, 64], sizes = [8, 32], strides = [1, 1]} : vector<8x128xf32> to vector<8x32xf32>
    %cst_78 = arith.constant 1.000000e+00 : f32
    %280 = vector.broadcast %cst_78 : f32 to vector<8x32xf32>
    %281 = arith.addf %279, %280 : vector<8x32xf32>
    %cst_79 = arith.constant 5.000000e-01 : f32
    %282 = vector.broadcast %cst_79 : f32 to vector<8x32xf32>
    %283 = arith.mulf %282, %281 : vector<8x32xf32>
    %284 = vector.extract_strided_slice %268 {offsets = [0, 96], sizes = [8, 32], strides = [1, 1]} : vector<8x128xf32> to vector<8x32xf32>
    %285 = arith.mulf %278, %233 : vector<8x32xf32>
    %286 = arith.mulf %273, %284 : vector<8x32xf32>
    %287 = arith.addf %285, %286 : vector<8x32xf32>
    %288 = math.tanh %287 : vector<8x32xf32>
    %289 = arith.mulf %283, %288 : vector<8x32xf32>
    %290 = vector.extract_strided_slice %263 {offsets = [0, 128], sizes = [8, 128], strides = [1, 1]} : vector<8x256xf32> to vector<8x128xf32>
    %291 = arith.addf %290, %17 : vector<8x128xf32>
    %292 = arith.mulf %291, %5 : vector<8x128xf32>
    %293 = math.tanh %292 : vector<8x128xf32>
    %294 = vector.extract_strided_slice %293 {offsets = [0, 0], sizes = [8, 32], strides = [1, 1]} : vector<8x128xf32> to vector<8x32xf32>
    %cst_80 = arith.constant 1.000000e+00 : f32
    %295 = vector.broadcast %cst_80 : f32 to vector<8x32xf32>
    %296 = arith.addf %294, %295 : vector<8x32xf32>
    %cst_81 = arith.constant 5.000000e-01 : f32
    %297 = vector.broadcast %cst_81 : f32 to vector<8x32xf32>
    %298 = arith.mulf %297, %296 : vector<8x32xf32>
    %299 = vector.extract_strided_slice %293 {offsets = [0, 32], sizes = [8, 32], strides = [1, 1]} : vector<8x128xf32> to vector<8x32xf32>
    %cst_82 = arith.constant 1.000000e+00 : f32
    %300 = vector.broadcast %cst_82 : f32 to vector<8x32xf32>
    %301 = arith.addf %299, %300 : vector<8x32xf32>
    %cst_83 = arith.constant 5.000000e-01 : f32
    %302 = vector.broadcast %cst_83 : f32 to vector<8x32xf32>
    %303 = arith.mulf %302, %301 : vector<8x32xf32>
    %304 = vector.extract_strided_slice %293 {offsets = [0, 64], sizes = [8, 32], strides = [1, 1]} : vector<8x128xf32> to vector<8x32xf32>
    %cst_84 = arith.constant 1.000000e+00 : f32
    %305 = vector.broadcast %cst_84 : f32 to vector<8x32xf32>
    %306 = arith.addf %304, %305 : vector<8x32xf32>
    %cst_85 = arith.constant 5.000000e-01 : f32
    %307 = vector.broadcast %cst_85 : f32 to vector<8x32xf32>
    %308 = arith.mulf %307, %306 : vector<8x32xf32>
    %309 = vector.extract_strided_slice %293 {offsets = [0, 96], sizes = [8, 32], strides = [1, 1]} : vector<8x128xf32> to vector<8x32xf32>
    %310 = arith.mulf %303, %258 : vector<8x32xf32>
    %311 = arith.mulf %298, %309 : vector<8x32xf32>
    %312 = arith.addf %310, %311 : vector<8x32xf32>
    %313 = math.tanh %312 : vector<8x32xf32>
    %314 = arith.mulf %308, %313 : vector<8x32xf32>
    %315 = tpu.concatenate %289, %314 in 1 : vector<8x32xf32>, vector<8x32xf32> -> vector<8x64xf32>
    %316 = arith.truncf %315 : vector<8x64xf32> to vector<8x64xbf16>
    %cst_86 = arith.constant dense<0.000000e+00> : vector<8x256xf32>
    %317 = tpu.matmul %316, %14, %cst_86 {dimension_numbers = #tpu.dot_dimension_numbers<[1], [0], [0], [1], [0, 0, 1, 1], [], []>} : vector<8x64xbf16>, vector<64x256xbf16>, vector<8x256xf32> -> vector<8x256xf32>
    %318 = vector.extract_strided_slice %317 {offsets = [0, 0], sizes = [8, 128], strides = [1, 1]} : vector<8x256xf32> to vector<8x128xf32>
    %319 = vector.extract_strided_slice %13 {offsets = [48, 0], sizes = [8, 128], strides = [1, 1]} : vector<64x128xf32> to vector<8x128xf32>
    %320 = arith.addf %318, %319 : vector<8x128xf32>
    %321 = arith.mulf %320, %5 : vector<8x128xf32>
    %322 = math.tanh %321 : vector<8x128xf32>
    %323 = vector.extract_strided_slice %322 {offsets = [0, 0], sizes = [8, 32], strides = [1, 1]} : vector<8x128xf32> to vector<8x32xf32>
    %cst_87 = arith.constant 1.000000e+00 : f32
    %324 = vector.broadcast %cst_87 : f32 to vector<8x32xf32>
    %325 = arith.addf %323, %324 : vector<8x32xf32>
    %cst_88 = arith.constant 5.000000e-01 : f32
    %326 = vector.broadcast %cst_88 : f32 to vector<8x32xf32>
    %327 = arith.mulf %326, %325 : vector<8x32xf32>
    %328 = vector.extract_strided_slice %322 {offsets = [0, 32], sizes = [8, 32], strides = [1, 1]} : vector<8x128xf32> to vector<8x32xf32>
    %cst_89 = arith.constant 1.000000e+00 : f32
    %329 = vector.broadcast %cst_89 : f32 to vector<8x32xf32>
    %330 = arith.addf %328, %329 : vector<8x32xf32>
    %cst_90 = arith.constant 5.000000e-01 : f32
    %331 = vector.broadcast %cst_90 : f32 to vector<8x32xf32>
    %332 = arith.mulf %331, %330 : vector<8x32xf32>
    %333 = vector.extract_strided_slice %322 {offsets = [0, 64], sizes = [8, 32], strides = [1, 1]} : vector<8x128xf32> to vector<8x32xf32>
    %cst_91 = arith.constant 1.000000e+00 : f32
    %334 = vector.broadcast %cst_91 : f32 to vector<8x32xf32>
    %335 = arith.addf %333, %334 : vector<8x32xf32>
    %cst_92 = arith.constant 5.000000e-01 : f32
    %336 = vector.broadcast %cst_92 : f32 to vector<8x32xf32>
    %337 = arith.mulf %336, %335 : vector<8x32xf32>
    %338 = vector.extract_strided_slice %322 {offsets = [0, 96], sizes = [8, 32], strides = [1, 1]} : vector<8x128xf32> to vector<8x32xf32>
    %339 = arith.mulf %332, %287 : vector<8x32xf32>
    %340 = arith.mulf %327, %338 : vector<8x32xf32>
    %341 = arith.addf %339, %340 : vector<8x32xf32>
    %342 = math.tanh %341 : vector<8x32xf32>
    %343 = arith.mulf %337, %342 : vector<8x32xf32>
    %344 = vector.extract_strided_slice %317 {offsets = [0, 128], sizes = [8, 128], strides = [1, 1]} : vector<8x256xf32> to vector<8x128xf32>
    %345 = arith.addf %344, %17 : vector<8x128xf32>
    %346 = arith.mulf %345, %5 : vector<8x128xf32>
    %347 = math.tanh %346 : vector<8x128xf32>
    %348 = vector.extract_strided_slice %347 {offsets = [0, 0], sizes = [8, 32], strides = [1, 1]} : vector<8x128xf32> to vector<8x32xf32>
    %cst_93 = arith.constant 1.000000e+00 : f32
    %349 = vector.broadcast %cst_93 : f32 to vector<8x32xf32>
    %350 = arith.addf %348, %349 : vector<8x32xf32>
    %cst_94 = arith.constant 5.000000e-01 : f32
    %351 = vector.broadcast %cst_94 : f32 to vector<8x32xf32>
    %352 = arith.mulf %351, %350 : vector<8x32xf32>
    %353 = vector.extract_strided_slice %347 {offsets = [0, 32], sizes = [8, 32], strides = [1, 1]} : vector<8x128xf32> to vector<8x32xf32>
    %cst_95 = arith.constant 1.000000e+00 : f32
    %354 = vector.broadcast %cst_95 : f32 to vector<8x32xf32>
    %355 = arith.addf %353, %354 : vector<8x32xf32>
    %cst_96 = arith.constant 5.000000e-01 : f32
    %356 = vector.broadcast %cst_96 : f32 to vector<8x32xf32>
    %357 = arith.mulf %356, %355 : vector<8x32xf32>
    %358 = vector.extract_strided_slice %347 {offsets = [0, 64], sizes = [8, 32], strides = [1, 1]} : vector<8x128xf32> to vector<8x32xf32>
    %cst_97 = arith.constant 1.000000e+00 : f32
    %359 = vector.broadcast %cst_97 : f32 to vector<8x32xf32>
    %360 = arith.addf %358, %359 : vector<8x32xf32>
    %cst_98 = arith.constant 5.000000e-01 : f32
    %361 = vector.broadcast %cst_98 : f32 to vector<8x32xf32>
    %362 = arith.mulf %361, %360 : vector<8x32xf32>
    %363 = vector.extract_strided_slice %347 {offsets = [0, 96], sizes = [8, 32], strides = [1, 1]} : vector<8x128xf32> to vector<8x32xf32>
    %364 = arith.mulf %357, %312 : vector<8x32xf32>
    %365 = arith.mulf %352, %363 : vector<8x32xf32>
    %366 = arith.addf %364, %365 : vector<8x32xf32>
    %367 = math.tanh %366 : vector<8x32xf32>
    %368 = arith.mulf %362, %367 : vector<8x32xf32>
    %369 = tpu.concatenate %343, %368 in 1 : vector<8x32xf32>, vector<8x32xf32> -> vector<8x64xf32>
    %370 = arith.truncf %369 : vector<8x64xf32> to vector<8x64xbf16>
    %cst_99 = arith.constant dense<0.000000e+00> : vector<8x256xf32>
    %371 = tpu.matmul %370, %14, %cst_99 {dimension_numbers = #tpu.dot_dimension_numbers<[1], [0], [0], [1], [0, 0, 1, 1], [], []>} : vector<8x64xbf16>, vector<64x256xbf16>, vector<8x256xf32> -> vector<8x256xf32>
    %372 = vector.extract_strided_slice %371 {offsets = [0, 0], sizes = [8, 128], strides = [1, 1]} : vector<8x256xf32> to vector<8x128xf32>
    %373 = vector.extract_strided_slice %13 {offsets = [56, 0], sizes = [8, 128], strides = [1, 1]} : vector<64x128xf32> to vector<8x128xf32>
    %374 = arith.addf %372, %373 : vector<8x128xf32>
    %375 = arith.mulf %374, %5 : vector<8x128xf32>
    %376 = math.tanh %375 : vector<8x128xf32>
    %377 = vector.extract_strided_slice %376 {offsets = [0, 0], sizes = [8, 32], strides = [1, 1]} : vector<8x128xf32> to vector<8x32xf32>
    %cst_100 = arith.constant 1.000000e+00 : f32
    %378 = vector.broadcast %cst_100 : f32 to vector<8x32xf32>
    %379 = arith.addf %377, %378 : vector<8x32xf32>
    %cst_101 = arith.constant 5.000000e-01 : f32
    %380 = vector.broadcast %cst_101 : f32 to vector<8x32xf32>
    %381 = arith.mulf %380, %379 : vector<8x32xf32>
    %382 = vector.extract_strided_slice %376 {offsets = [0, 32], sizes = [8, 32], strides = [1, 1]} : vector<8x128xf32> to vector<8x32xf32>
    %cst_102 = arith.constant 1.000000e+00 : f32
    %383 = vector.broadcast %cst_102 : f32 to vector<8x32xf32>
    %384 = arith.addf %382, %383 : vector<8x32xf32>
    %cst_103 = arith.constant 5.000000e-01 : f32
    %385 = vector.broadcast %cst_103 : f32 to vector<8x32xf32>
    %386 = arith.mulf %385, %384 : vector<8x32xf32>
    %387 = vector.extract_strided_slice %376 {offsets = [0, 64], sizes = [8, 32], strides = [1, 1]} : vector<8x128xf32> to vector<8x32xf32>
    %cst_104 = arith.constant 1.000000e+00 : f32
    %388 = vector.broadcast %cst_104 : f32 to vector<8x32xf32>
    %389 = arith.addf %387, %388 : vector<8x32xf32>
    %cst_105 = arith.constant 5.000000e-01 : f32
    %390 = vector.broadcast %cst_105 : f32 to vector<8x32xf32>
    %391 = arith.mulf %390, %389 : vector<8x32xf32>
    %392 = vector.extract_strided_slice %376 {offsets = [0, 96], sizes = [8, 32], strides = [1, 1]} : vector<8x128xf32> to vector<8x32xf32>
    %393 = arith.mulf %386, %341 : vector<8x32xf32>
    %394 = arith.mulf %381, %392 : vector<8x32xf32>
    %395 = arith.addf %393, %394 : vector<8x32xf32>
    %396 = math.tanh %395 : vector<8x32xf32>
    %397 = arith.mulf %391, %396 : vector<8x32xf32>
    %398 = vector.extract_strided_slice %371 {offsets = [0, 128], sizes = [8, 128], strides = [1, 1]} : vector<8x256xf32> to vector<8x128xf32>
    %399 = arith.addf %398, %17 : vector<8x128xf32>
    %400 = arith.mulf %399, %5 : vector<8x128xf32>
    %401 = math.tanh %400 : vector<8x128xf32>
    %402 = vector.extract_strided_slice %401 {offsets = [0, 0], sizes = [8, 32], strides = [1, 1]} : vector<8x128xf32> to vector<8x32xf32>
    %cst_106 = arith.constant 1.000000e+00 : f32
    %403 = vector.broadcast %cst_106 : f32 to vector<8x32xf32>
    %404 = arith.addf %402, %403 : vector<8x32xf32>
    %cst_107 = arith.constant 5.000000e-01 : f32
    %405 = vector.broadcast %cst_107 : f32 to vector<8x32xf32>
    %406 = arith.mulf %405, %404 : vector<8x32xf32>
    %407 = vector.extract_strided_slice %401 {offsets = [0, 32], sizes = [8, 32], strides = [1, 1]} : vector<8x128xf32> to vector<8x32xf32>
    %cst_108 = arith.constant 1.000000e+00 : f32
    %408 = vector.broadcast %cst_108 : f32 to vector<8x32xf32>
    %409 = arith.addf %407, %408 : vector<8x32xf32>
    %cst_109 = arith.constant 5.000000e-01 : f32
    %410 = vector.broadcast %cst_109 : f32 to vector<8x32xf32>
    %411 = arith.mulf %410, %409 : vector<8x32xf32>
    %412 = vector.extract_strided_slice %401 {offsets = [0, 64], sizes = [8, 32], strides = [1, 1]} : vector<8x128xf32> to vector<8x32xf32>
    %cst_110 = arith.constant 1.000000e+00 : f32
    %413 = vector.broadcast %cst_110 : f32 to vector<8x32xf32>
    %414 = arith.addf %412, %413 : vector<8x32xf32>
    %cst_111 = arith.constant 5.000000e-01 : f32
    %415 = vector.broadcast %cst_111 : f32 to vector<8x32xf32>
    %416 = arith.mulf %415, %414 : vector<8x32xf32>
    %417 = vector.extract_strided_slice %401 {offsets = [0, 96], sizes = [8, 32], strides = [1, 1]} : vector<8x128xf32> to vector<8x32xf32>
    %418 = arith.mulf %411, %366 : vector<8x32xf32>
    %419 = arith.mulf %406, %417 : vector<8x32xf32>
    %420 = arith.addf %418, %419 : vector<8x32xf32>
    %421 = math.tanh %420 : vector<8x32xf32>
    %422 = arith.mulf %416, %421 : vector<8x32xf32>
    %423 = tpu.concatenate %397, %422 in 1 : vector<8x32xf32>, vector<8x32xf32> -> vector<8x64xf32>
    %424 = arith.truncf %423 : vector<8x64xf32> to vector<8x64xbf16>
    %425 = vector.extract_strided_slice %14 {offsets = [0, 128], sizes = [64, 128], strides = [1, 1]} : vector<64x256xbf16> to vector<64x128xbf16>
    %cst_112 = arith.constant dense<0.000000e+00> : vector<8x128xf32>
    %426 = tpu.matmul %424, %425, %cst_112 {dimension_numbers = #tpu.dot_dimension_numbers<[1], [0], [0], [1], [0, 0, 1, 1], [], []>} : vector<8x64xbf16>, vector<64x128xbf16>, vector<8x128xf32> -> vector<8x128xf32>
    %427 = arith.addf %426, %17 : vector<8x128xf32>
    %428 = arith.mulf %427, %5 : vector<8x128xf32>
    %429 = math.tanh %428 : vector<8x128xf32>
    %430 = vector.extract_strided_slice %429 {offsets = [0, 0], sizes = [8, 32], strides = [1, 1]} : vector<8x128xf32> to vector<8x32xf32>
    %cst_113 = arith.constant 1.000000e+00 : f32
    %431 = vector.broadcast %cst_113 : f32 to vector<8x32xf32>
    %432 = arith.addf %430, %431 : vector<8x32xf32>
    %cst_114 = arith.constant 5.000000e-01 : f32
    %433 = vector.broadcast %cst_114 : f32 to vector<8x32xf32>
    %434 = arith.mulf %433, %432 : vector<8x32xf32>
    %435 = vector.extract_strided_slice %429 {offsets = [0, 32], sizes = [8, 32], strides = [1, 1]} : vector<8x128xf32> to vector<8x32xf32>
    %cst_115 = arith.constant 1.000000e+00 : f32
    %436 = vector.broadcast %cst_115 : f32 to vector<8x32xf32>
    %437 = arith.addf %435, %436 : vector<8x32xf32>
    %cst_116 = arith.constant 5.000000e-01 : f32
    %438 = vector.broadcast %cst_116 : f32 to vector<8x32xf32>
    %439 = arith.mulf %438, %437 : vector<8x32xf32>
    %440 = vector.extract_strided_slice %429 {offsets = [0, 64], sizes = [8, 32], strides = [1, 1]} : vector<8x128xf32> to vector<8x32xf32>
    %cst_117 = arith.constant 1.000000e+00 : f32
    %441 = vector.broadcast %cst_117 : f32 to vector<8x32xf32>
    %442 = arith.addf %440, %441 : vector<8x32xf32>
    %cst_118 = arith.constant 5.000000e-01 : f32
    %443 = vector.broadcast %cst_118 : f32 to vector<8x32xf32>
    %444 = arith.mulf %443, %442 : vector<8x32xf32>
    %445 = vector.extract_strided_slice %429 {offsets = [0, 96], sizes = [8, 32], strides = [1, 1]} : vector<8x128xf32> to vector<8x32xf32>
    %446 = arith.mulf %439, %420 : vector<8x32xf32>
    %447 = arith.mulf %434, %445 : vector<8x32xf32>
    %448 = arith.addf %446, %447 : vector<8x32xf32>
    %449 = math.tanh %448 : vector<8x32xf32>
    %450 = arith.mulf %444, %449 : vector<8x32xf32>
    %451 = tpu.concatenate %98, %152, %206, %260, %314, %368, %422, %450 in 0 : vector<8x32xf32>, vector<8x32xf32>, vector<8x32xf32>, vector<8x32xf32>, vector<8x32xf32>, vector<8x32xf32>, vector<8x32xf32>, vector<8x32xf32> -> vector<64x32xf32>
    %452 = arith.truncf %451 : vector<64x32xf32> to vector<64x32xbf16>
    %c0_119 = arith.constant 0 : index
    %c0_120 = arith.constant 0 : index
    %453 = vector.load %arg6[%c0_119, %c0_120] : memref<32x128xbf16, #tpu.memory_space<vmem>>, vector<32x128xbf16>
    %cst_121 = arith.constant dense<0.000000e+00> : vector<64x128xf32>
    %454 = tpu.matmul %452, %453, %cst_121 {dimension_numbers = #tpu.dot_dimension_numbers<[1], [0], [0], [1], [0, 0, 1, 1], [], []>} : vector<64x32xbf16>, vector<32x128xbf16>, vector<64x128xf32> -> vector<64x128xf32>
    %c0_122 = arith.constant 0 : index
    %c0_123 = arith.constant 0 : index
    %455 = vector.load %arg7[%c0_122, %c0_123] : memref<1x128xf32, #tpu.memory_space<vmem>>, vector<1x128xf32>
    %456 = vector.broadcast %455 : vector<1x128xf32> to vector<64x128xf32>
    %457 = arith.addf %454, %456 : vector<64x128xf32>
    %458 = vector.shape_cast %457 : vector<64x128xf32> to vector<8x8x128xf32>
    %c0_124 = arith.constant 0 : index
    %c0_125 = arith.constant 0 : index
    %c0_126 = arith.constant 0 : index
    %459 = vector.load %arg8[%c0_124, %c0_125, %c0_126] : memref<8x8x128xf32, #tpu.memory_space<vmem>>, vector<8x8x128xf32>
    tpu.vector_store %arg8[%c0_124, %c0_125, %c0_126], %458 {strides = array<i32>} : memref<8x8x128xf32, #tpu.memory_space<vmem>>, vector<8x8x128xf32>,
    return
  }
  func.func @transform_0(%arg0: i32) -> (i32, i32, i32) {
    %c0_i32 = arith.constant 0 : i32
    %c0_i32_0 = arith.constant 0 : i32
    %c0_i32_1 = arith.constant 0 : i32
    return %c0_i32, %arg0, %c0_i32_0 : i32, i32, i32
  }
  func.func @transform_1(%arg0: i32) -> (i32, i32) {
    %c0_i32 = arith.constant 0 : i32
    %c0_i32_0 = arith.constant 0 : i32
    %c0_i32_1 = arith.constant 0 : i32
    return %c0_i32, %c0_i32_0 : i32, i32
  }
  func.func @transform_2(%arg0: i32) -> (i32, i32) {
    %c0_i32 = arith.constant 0 : i32
    %c0_i32_0 = arith.constant 0 : i32
    %c0_i32_1 = arith.constant 0 : i32
    return %c0_i32, %c0_i32_0 : i32, i32
  }
  func.func @transform_3(%arg0: i32) -> (i32, i32) {
    %c0_i32 = arith.constant 0 : i32
    %c0_i32_0 = arith.constant 0 : i32
    %c0_i32_1 = arith.constant 0 : i32
    return %c0_i32, %c0_i32_0 : i32, i32
  }
  func.func @transform_4(%arg0: i32) -> (i32, i32) {
    %c0_i32 = arith.constant 0 : i32
    %c0_i32_0 = arith.constant 0 : i32
    %c0_i32_1 = arith.constant 0 : i32
    return %c0_i32, %c0_i32_0 : i32, i32
  }
  func.func @transform_5(%arg0: i32) -> (i32, i32) {
    %c0_i32 = arith.constant 0 : i32
    %c0_i32_0 = arith.constant 0 : i32
    %c0_i32_1 = arith.constant 0 : i32
    return %c0_i32, %c0_i32_0 : i32, i32
  }
  func.func @transform_6(%arg0: i32) -> (i32, i32) {
    %c0_i32 = arith.constant 0 : i32
    %c0_i32_0 = arith.constant 0 : i32
    %c0_i32_1 = arith.constant 0 : i32
    return %c0_i32, %c0_i32_0 : i32, i32
  }
  func.func @transform_7(%arg0: i32) -> (i32, i32, i32) {
    %c0_i32 = arith.constant 0 : i32
    %c0_i32_0 = arith.constant 0 : i32
    %c0_i32_1 = arith.constant 0 : i32
    return %c0_i32, %arg0, %c0_i32_0 : i32, i32, i32
  }
}

</mosaic_0001>

<bundles_post_ra>
// kernel: star_trek_lstm_forward.1
= control target key start
LH: loop header
LB: loop body
LE: loop exit
PB: predicated region body
PF: predicated region fallthrough
CT: control target
= control target key end

     0   :  { %vm66_vm0 = vcmask 261120   ;;  %v27_v8 = vlaneseq  ;;  %v1276_v12 = vmov 1.0   ;;  %s1277_s14 = smov 32   ;;  %v1278_v34 = vmov 0   ;;  %s1279_s30 = smov 64   ;;  %s1682_s1 = inlined_call_operand.vmem [shape: bf16[32,128], index: 1, kind: input, shape index: {}]   ;;  %s1683_s0 = inlined_call_operand.vmem [shape: f32[8,8,32], index: 0, kind: input, shape index: {}]   ;;  %s1684_s2 = inlined_call_operand.vmem [shape: f32[1,128], index: 2, kind: input, shape index: {}]   ;;  %s1685_s3 = inlined_call_operand.vmem [shape: bf16[64,256], index: 3, kind: input, shape index: {}]   ;;  %s1686_s4 = inlined_call_operand.vmem [shape: f32[1,128], index: 4, kind: input, shape index: {}]   ;;  %s1687_s5 = inlined_call_operand.vmem [shape: bf16[32,128], index: 5, kind: input, shape index: {}]   ;;  %s1688_s6 = inlined_call_operand.vmem [shape: f32[1,128], index: 6, kind: input, shape index: {}]   ;;  %s1689_s7 = inlined_call_operand.vmem [shape: f32[8,8,128], index: 7, kind: output, shape index: {}]  }
   0x1   :  { %v1196_v0 = vld [vmem:[%s1682_s1 + $0x8] sm:$0xff]   ;;  %v1197_v1 = vld [vmem:[%s1682_s1] sm:$0xff]   ;;  %v33_v5 = vld [vmem:[%s1683_s0 + $0x10] sm:$0xff]  ;;  %262 = vmatprep.mubr.bf16.mxu1 %v1278_v34  ;;  %vm226_vm2 = vcmask 523264   ;;  %vm1282_vm3 = vmmov 0  }
   0x2   :  { %1153 = vmatprep.subr.bf16.mxu0 %v1196_v0  ;;  %v31_v2 = vld [vmem:[%s1683_s0] sm:$0xff]  ;;  %v32_v3 = vld [vmem:[%s1683_s0 + $0x8] sm:$0xff]  ;;  %v34_v6 = vld [vmem:[%s1683_s0 + $0x18] sm:$0xff]  ;;  %v28_v9 = vand.u32 127, %v27_v8 }
   0x3   :  { %1154 = vmatpush3.bf16.msra.mxu0 %v1196_v0  ;;  %v39_v4 = vpack.c.bf16 %v32_v3, %v31_v2  ;;  %v40_v7 = vpack.c.bf16 %v34_v6, %v33_v5  ;;  %v1348_v11 = vld [vmem:[%s1684_s2] ss:$0 sm:$0xff]  ;;  %v1362_v25 = vld [vmem:[%s1685_s3 + $0x34] ss:$8 sps:$4 sm:$0xff]   ;;  %v1367_v26 = vld [vmem:[%s1685_s3 + $0x30] ss:$8 sps:$4 sm:$0xff]  }
   0x4   :  { %1155 = vmatprep.subr.bf16.mxu0 %v1197_v1  ;;  %vm29_vm1 = vcmp.lt.s32.totalorder %v28_v9, 96  ;;  %238 = vmatprep.subr.bf16.mxu1 %v1362_v25  ;;  %v1373_v27 = vld [vmem:[%s1685_s3 + $0x24] ss:$8 sps:$4 sm:$0xff]   ;;  %v1380_v28 = vld [vmem:[%s1685_s3 + $0x20] ss:$8 sps:$4 sm:$0xff]   ;;  %v37_v6 = vld [vmem:[%s1683_s0 + $0x30] sm:$0xff] }
   0x5   :  { %1157 = vmatprep.mubr.msk.bf16.mxu0 %vm66_vm0, %v39_v4  ;;  %v1350_v13 = vsel %vm29_vm1, 0.5, %v1276_v12  ;;  %239 = vmatpush1.bf16.msra.mxu1 %v1367_v26  ;;  %v1387_v29 = vld [vmem:[%s1685_s3 + $0x14] ss:$8 sps:$4 sm:$0xff]   ;;  %v1394_v30 = vld [vmem:[%s1685_s3 + $0x10] ss:$8 sps:$4 sm:$0xff]   ;;  %v35_v4 = vld [vmem:[%s1683_s0 + $0x20] sm:$0xff] }
   0x6   :  { %240 = vmatprep.subr.bf16.mxu1 %v1373_v27  ;;  %v1401_v31 = vld [vmem:[%s1685_s3 + $0x4] ss:$8 sps:$4 sm:$0xff]   ;;  %v1412_v33 = vld [vmem:[%s1685_s3] ss:$8 sps:$4 sm:$0xff]   ;;  %v38_v8 = vld [vmem:[%s1683_s0 + $0x38] sm:$0xff] }
   0x7   :  { %1156 = vmatpush3.bf16.msra.mxu0 %v1197_v1  ;;  %v1437_v44 = vld [vmem:[%s1686_s4] ss:$0 sm:$0xff]  ;;  %v36_v5 = vld [vmem:[%s1683_s0 + $0x28] sm:$0xff]  ;;  %v42_v9 = vpack.c.bf16 %v38_v8, %v37_v6  ;;  %s1280_s0 = smov 96  }
   0x8   :  { %336 = vmatprep.subr.bf16.mxu0 %v1362_v25 }
   0x9   :  { %241 = vmatpush1.bf16.msra.mxu1 %v1380_v28 }
   0xa   :  { %1158 = vmatmul.mubr.msk.bf16.vlgmr.msra.gmra.mxu0 %vm66_vm0, %v40_v7  ;;  %242 = vmatprep.subr.bf16.mxu1 %v1387_v29  ;;  %v41_v7 = vpack.c.bf16 %v36_v5, %v35_v4 }
   0xb   :  { %337 = vmatpush1.bf16.msra.mxu0 %v1367_v26 }
   0xc   :  { %338 = vmatprep.subr.bf16.mxu0 %v1373_v27  ;;  %1161 = vmatprep.mubr.msk.bf16.mxu0 %vm66_vm0, %v41_v7 }
   0xd   :  { %243 = vmatpush1.bf16.msra.mxu1 %v1394_v30 }
   0xe   :  { %244 = vmatprep.subr.bf16.mxu1 %v1401_v31 }
   0xf   :  { %339 = vmatpush1.bf16.msra.mxu0 %v1380_v28 }
  0x10   :  { %340 = vmatprep.subr.bf16.mxu0 %v1387_v29 }
  0x11   :  { %245 = vmatpush1.bf16.msra.mxu1 %v1412_v33 }
  0x12   :  { %434 = vmatprep.subr.bf16.mxu1 %v1362_v25  ;;  %1162 = vmatmul.mubr.msk.bf16.gmra.mxu0 %vm66_vm0, %v42_v9 }
  0x13   :  { %341 = vmatpush1.bf16.msra.mxu0 %v1394_v30  ;;  %360 = vmatprep.mubr.bf16.mxu0 %v1278_v34 }
  0x14   :  { %342 = vmatprep.subr.bf16.mxu0 %v1401_v31 }
  0x17   :  { %343 = vmatpush1.bf16.msra.mxu0 %v1412_v33 }
  0x18   :  { %532 = vmatprep.subr.bf16.mxu0 %v1362_v25 }
  0xca   :  { %v1343_v10 = vpop.f32.mrf.mxu0 }
  0xcc   :  { %v113_v14 = vpop.f32.mrf.mxu0 }
  0xcd   :  { %v114_v15 = vadd.f32 %v1348_v11, %v113_v14 }
  0xce   :  { %v1431_v40 = vpop.f32.mrf.mxu0 }
  0xcf   :  { %v159_v16 = vmul.f32 %v114_v15, %v1350_v13  ;;  %v125_v8 = vadd.f32 %v1431_v40, %v1348_v11 }
  0xd0   :  { %v116_v41 = vpop.f32.mrf.mxu0 }
  0xd1   :  { %1212 = vtanh.f32 %v159_v16  ;;  %v117_v42 = vadd.f32 %v1348_v11, %v116_v41 }
  0xde   :  { %v1213_v17 = vpop.eup %1212 }
  0xdf   :  { %165 = vrot.lane.b32.xlu0 %v1213_v17, %s1277_s14  ;;  %v161_v18 = vadd.f32 1.0, %v1213_v17 }
  0xe1   :  { %v162_v19 = vmul.f32 0.5, %v161_v18 }
  0xe3   :  { %v163_v22 = vmul.f32 0.0, %v162_v19 }
 0x151   :  { %v166_v20 = vpop.permute.xlu0 %165 }
 0x152   :  { %v168_v21 = vmul.f32 %v166_v20, %v162_v19 }
 0x154   :  { %170 = vrot.lane.b32.xlu0 %v168_v21, %s1277_s14 }
 0x1c6   :  { %v171_v23 = vpop.permute.xlu0 %170 }
 0x1c7   :  { %v1356_v24 = vadd.f32 %v171_v23, %v163_v22  ;;  %v1486_v23 = vpop.f32.mrf.mxu0 }
 0x1c9   :  { %1214 = vtanh.f32 %v1356_v24 }
 0x1d6   :  { %v1215_v32 = vpop.eup %1214 }
 0x1d7   :  { %176 = vrot.lane.b32.xlu1 %v1215_v32, %s1277_s14 }
 0x249   :  { %v177_v35 = vpop.permute.xlu1 %176 }
 0x24a   :  { %v179_v36 = vmul.f32 %v177_v35, %v162_v19 }
 0x24c   :  { %181 = vrot.lane.b32.xlu1 %v179_v36, %s1279_s30  ;;  %v122_v36 = vadd.f32 %v1343_v10, %v1348_v11 }
 0x2be   :  { %v182_v37 = vpop.permute.xlu1 %181 }
 0x2bf   :  { %v184_v38 = vsel %vm66_vm0, %v182_v37, 0.0 }
 0x2c0   :  { %v185_v39 = vpack.c.bf16 %v184_v38, %v184_v38 }
 0x2c2   :  { %1121 = vmatmul.mubr.msk.bf16.vlgmr.msra.gmra.mxu1 %vm226_vm2, %v185_v39 }
 0x2c3   :  { %435 = vmatpush1.bf16.msra.mxu1 %v1367_v26  ;;  %458 = vmatprep.mubr.bf16.mxu1 %v1278_v34 }
 0x2c4   :  { %436 = vmatprep.subr.bf16.mxu1 %v1373_v27 }
 0x2c7   :  { %437 = vmatpush1.bf16.msra.mxu1 %v1380_v28 }
 0x2c8   :  { %438 = vmatprep.subr.bf16.mxu1 %v1387_v29 }
 0x2cb   :  { %439 = vmatpush1.bf16.msra.mxu1 %v1394_v30 }
 0x2cc   :  { %440 = vmatprep.subr.bf16.mxu1 %v1401_v31 }
 0x2cf   :  { %441 = vmatpush1.bf16.msra.mxu1 %v1412_v33 }
 0x2d0   :  { %630 = vmatprep.subr.bf16.mxu1 %v1362_v25 }
 0x382   :  { %v264_v43 = vpop.f32.mrf.mxu1 }
 0x383   :  { %v271_v45 = vadd.f32 %v264_v43, %v117_v42 }
 0x384   :  { %v266_v46 = vpop.f32.mrf.mxu1 }
 0x385   :  { %v272_v47 = vmul.f32 %v271_v45, %v1350_v13  ;;  %v293_v48 = vadd.f32 %v1437_v44, %v266_v46 }
 0x386   :  { %v268_v49 = vpop.f32.mrf.mxu1 }
 0x387   :  { %1216 = vtanh.f32 %v272_v47  ;;  %v294_v50 = vmul.f32 %v293_v48, %v1350_v13 }
 0x388   :  { %v269_v51 = vpop.f32.mrf.mxu1 }
 0x389   :  { %1218 = vtanh.f32 %v294_v50 }
 0x394   :  { %v1217_v52 = vpop.eup %1216 }
 0x395   :  { %278 = vrot.lane.b32.xlu0 %v1217_v52, %s1277_s14  ;;  %v274_v54 = vadd.f32 1.0, %v1217_v52 }
 0x396   :  { %v1219_v53 = vpop.eup %1218 }
 0x397   :  { %300 = vrot.lane.b32.xlu1 %v1219_v53, %s1277_s14  ;;  %v296_v55 = vadd.f32 1.0, %v1219_v53  ;;  %v275_v56 = vmul.f32 0.5, %v274_v54 }
 0x399   :  { %v297_v59 = vmul.f32 0.5, %v296_v55  ;;  %v276_v62 = vmul.f32 %v275_v56, %v1356_v24  ;;  %v1488_v24 = vpop.f32.mrf.mxu0 }
 0x39b   :  { %v298_v1 = vmul.f32 0.0, %v297_v59  ;;  %v1490_v32 = vpop.f32.mrf.mxu0 }
 0x39d   :  { %v1492_v35 = vpop.f32.mrf.mxu0 }
 0x407   :  { %v279_v57 = vpop.permute.xlu0 %278 }
 0x408   :  { %v281_v58 = vmul.f32 %v279_v57, %v275_v56 }
 0x409   :  { %v301_v60 = vpop.permute.xlu1 %300 }
 0x40a   :  { %v303_v61 = vmul.f32 %v301_v60, %v297_v59  ;;  %283 = vrot.lane.b32.xlu0 %v281_v58, %s1277_s14 }
 0x40c   :  { %305 = vrot.lane.b32.xlu1 %v303_v61, %s1277_s14 }
 0x47c   :  { %v284_v63 = vpop.permute.xlu0 %283 }
 0x47d   :  { %v1447_v0 = vadd.f32 %v284_v63, %v276_v62 }
 0x47e   :  { %v306_v2 = vpop.permute.xlu1 %305 }
 0x47f   :  { %1220 = vtanh.f32 %v1447_v0  ;;  %v1450_v3 = vadd.f32 %v306_v2, %v298_v1 }
 0x481   :  { %1222 = vtanh.f32 %v1450_v3 }
 0x48c   :  { %v1221_v12 = vpop.eup %1220 }
 0x48d   :  { %289 = vrot.lane.b32.xlu0 %v1221_v12, %s1277_s14 }
 0x48e   :  { %v1223_v14 = vpop.eup %1222 }
 0x48f   :  { %311 = vrot.lane.b32.xlu1 %v1223_v14, %s1277_s14 }
 0x4ff   :  { %v290_v15 = vpop.permute.xlu0 %289 }
 0x500   :  { %v292_v16 = vmul.f32 %v290_v15, %v275_v56 }
 0x501   :  { %v312_v17 = vpop.permute.xlu1 %311 }
 0x502   :  { %v1470_v18 = vmul.f32 %v312_v17, %v297_v59  ;;  %316 = vrot.lane.b32.xlu0 %v292_v16, %s1279_s30 }
 0x504   :  { %320 = vrot.lane.b32.xlu1 %v1470_v18, %s1280_s0 }
 0x574   :  { %v317_v19 = vpop.permute.xlu0 %316 }
 0x576   :  { %v321_v20 = vpop.permute.xlu1 %320 }
 0x577   :  { %v323_v21 = vsel %vm66_vm0, %v317_v19, %v321_v20 }
 0x578   :  { %v324_v22 = vpack.c.bf16 %v323_v21, %v323_v21 }
 0x57a   :  { %1122 = vmatmul.mubr.msk.bf16.vlgmr.msra.gmra.mxu0 %vm226_vm2, %v324_v22 }
 0x57b   :  { %533 = vmatpush1.bf16.msra.mxu0 %v1367_v26  ;;  %556 = vmatprep.mubr.bf16.mxu0 %v1278_v34 }
 0x57c   :  { %534 = vmatprep.subr.bf16.mxu0 %v1373_v27 }
 0x57f   :  { %535 = vmatpush1.bf16.msra.mxu0 %v1380_v28 }
 0x580   :  { %536 = vmatprep.subr.bf16.mxu0 %v1387_v29 }
 0x583   :  { %537 = vmatpush1.bf16.msra.mxu0 %v1394_v30 }
 0x584   :  { %538 = vmatprep.subr.bf16.mxu0 %v1401_v31 }
 0x587   :  { %539 = vmatpush1.bf16.msra.mxu0 %v1412_v33 }
 0x588   :  { %728 = vmatprep.subr.bf16.mxu0 %v1362_v25 }
 0x63a   :  { %v362_v37 = vpop.f32.mrf.mxu0 }
 0x63b   :  { %v369_v38 = vadd.f32 %v362_v37, %v122_v36 }
 0x63c   :  { %v364_v39 = vpop.f32.mrf.mxu0 }
 0x63d   :  { %v370_v41 = vmul.f32 %v369_v38, %v1350_v13  ;;  %v391_v42 = vadd.f32 %v1437_v44, %v364_v39 }
 0x63e   :  { %v366_v43 = vpop.f32.mrf.mxu0 }
 0x63f   :  { %1224 = vtanh.f32 %v370_v41  ;;  %v392_v45 = vmul.f32 %v391_v42, %v1350_v13 }
 0x640   :  { %v367_v46 = vpop.f32.mrf.mxu0 }
 0x641   :  { %1226 = vtanh.f32 %v392_v45 }
 0x64c   :  { %v1225_v47 = vpop.eup %1224 }
 0x64d   :  { %376 = vrot.lane.b32.xlu0 %v1225_v47, %s1277_s14  ;;  %v372_v10 = vadd.f32 1.0, %v1225_v47 }
 0x64e   :  { %v1227_v48 = vpop.eup %1226 }
 0x64f   :  { %398 = vrot.lane.b32.xlu1 %v1227_v48, %s1277_s14  ;;  %v394_v49 = vadd.f32 1.0, %v1227_v48  ;;  %v373_v50 = vmul.f32 0.5, %v372_v10 }
 0x651   :  { %v395_v53 = vmul.f32 0.5, %v394_v49  ;;  %v374_v56 = vmul.f32 %v373_v50, %v1447_v0 }
 0x653   :  { %v396_v59 = vmul.f32 %v395_v53, %v1450_v3 }
 0x6bf   :  { %v377_v51 = vpop.permute.xlu0 %376 }
 0x6c0   :  { %v379_v52 = vmul.f32 %v377_v51, %v373_v50 }
 0x6c1   :  { %v399_v54 = vpop.permute.xlu1 %398 }
 0x6c2   :  { %v401_v55 = vmul.f32 %v399_v54, %v395_v53  ;;  %381 = vrot.lane.b32.xlu0 %v379_v52, %s1277_s14 }
 0x6c4   :  { %403 = vrot.lane.b32.xlu1 %v401_v55, %s1277_s14 }
 0x734   :  { %v382_v57 = vpop.permute.xlu0 %381 }
 0x735   :  { %v384_v58 = vadd.f32 %v382_v57, %v374_v56 }
 0x736   :  { %v404_v60 = vpop.permute.xlu1 %403 }
 0x737   :  { %1228 = vtanh.f32 %v384_v58  ;;  %v406_v61 = vadd.f32 %v404_v60, %v396_v59  ;;  %v130_v60 = vadd.f32 %v1348_v11, %v1488_v24 }
 0x739   :  { %1230 = vtanh.f32 %v406_v61 }
 0x744   :  { %v1229_v62 = vpop.eup %1228 }
 0x745   :  { %387 = vrot.lane.b32.xlu0 %v1229_v62, %s1277_s14 }
 0x746   :  { %v1231_v63 = vpop.eup %1230 }
 0x747   :  { %409 = vrot.lane.b32.xlu1 %v1231_v63, %s1277_s14 }
 0x7b7   :  { %v388_v1 = vpop.permute.xlu0 %387 }
 0x7b8   :  { %v390_v2 = vmul.f32 %v388_v1, %v373_v50 }
 0x7b9   :  { %v410_v4 = vpop.permute.xlu1 %409 }
 0x7ba   :  { %v1507_v5 = vmul.f32 %v410_v4, %v395_v53  ;;  %414 = vrot.lane.b32.xlu0 %v390_v2, %s1279_s30 }
 0x7bc   :  { %418 = vrot.lane.b32.xlu1 %v1507_v5, %s1280_s0 }
 0x82c   :  { %v415_v0 = vpop.permute.xlu0 %414 }
 0x82e   :  { %v419_v3 = vpop.permute.xlu1 %418 }
 0x82f   :  { %v421_v6 = vsel %vm66_vm0, %v415_v0, %v419_v3 }
 0x830   :  { %v422_v7 = vpack.c.bf16 %v421_v6, %v421_v6 }
 0x832   :  { %1123 = vmatmul.mubr.msk.bf16.vlgmr.msra.gmra.mxu1 %vm226_vm2, %v422_v7 }
 0x833   :  { %631 = vmatpush1.bf16.msra.mxu1 %v1367_v26  ;;  %654 = vmatprep.mubr.bf16.mxu1 %v1278_v34 }
 0x834   :  { %632 = vmatprep.subr.bf16.mxu1 %v1373_v27 }
 0x837   :  { %633 = vmatpush1.bf16.msra.mxu1 %v1380_v28 }
 0x838   :  { %634 = vmatprep.subr.bf16.mxu1 %v1387_v29 }
 0x83b   :  { %635 = vmatpush1.bf16.msra.mxu1 %v1394_v30 }
 0x83c   :  { %636 = vmatprep.subr.bf16.mxu1 %v1401_v31 }
 0x83f   :  { %637 = vmatpush1.bf16.msra.mxu1 %v1412_v33 }
 0x840   :  { %826 = vmatprep.subr.bf16.mxu1 %v1362_v25 }
 0x8f2   :  { %v460_v9 = vpop.f32.mrf.mxu1 }
 0x8f3   :  { %v467_v12 = vadd.f32 %v460_v9, %v125_v8 }
 0x8f4   :  { %v462_v14 = vpop.f32.mrf.mxu1 }
 0x8f5   :  { %v468_v15 = vmul.f32 %v467_v12, %v1350_v13  ;;  %v489_v16 = vadd.f32 %v1437_v44, %v462_v14 }
 0x8f6   :  { %v464_v17 = vpop.f32.mrf.mxu1 }
 0x8f7   :  { %1232 = vtanh.f32 %v468_v15  ;;  %v490_v19 = vmul.f32 %v489_v16, %v1350_v13 }
 0x8f8   :  { %v465_v20 = vpop.f32.mrf.mxu1 }
 0x8f9   :  { %1234 = vtanh.f32 %v490_v19 }
 0x904   :  { %v1233_v21 = vpop.eup %1232 }
 0x905   :  { %474 = vrot.lane.b32.xlu0 %v1233_v21, %s1277_s14  ;;  %v470_v40 = vadd.f32 1.0, %v1233_v21 }
 0x906   :  { %v1235_v22 = vpop.eup %1234 }
 0x907   :  { %496 = vrot.lane.b32.xlu1 %v1235_v22, %s1277_s14  ;;  %v492_v36 = vadd.f32 1.0, %v1235_v22  ;;  %v471_v37 = vmul.f32 0.5, %v470_v40 }
 0x909   :  { %v493_v41 = vmul.f32 0.5, %v492_v36  ;;  %v472_v45 = vmul.f32 %v471_v37, %v384_v58 }
 0x90b   :  { %v494_v48 = vmul.f32 %v493_v41, %v406_v61 }
 0x977   :  { %v475_v38 = vpop.permute.xlu0 %474 }
 0x978   :  { %v477_v39 = vmul.f32 %v475_v38, %v471_v37 }
 0x979   :  { %v497_v42 = vpop.permute.xlu1 %496 }
 0x97a   :  { %v499_v43 = vmul.f32 %v497_v42, %v493_v41  ;;  %479 = vrot.lane.b32.xlu0 %v477_v39, %s1277_s14 }
 0x97c   :  { %501 = vrot.lane.b32.xlu1 %v499_v43, %s1277_s14 }
 0x9ec   :  { %v480_v46 = vpop.permute.xlu0 %479 }
 0x9ed   :  { %v482_v47 = vadd.f32 %v480_v46, %v472_v45 }
 0x9ee   :  { %v502_v10 = vpop.permute.xlu1 %501 }
 0x9ef   :  { %1236 = vtanh.f32 %v482_v47  ;;  %v504_v49 = vadd.f32 %v502_v10, %v494_v48  ;;  %v133_v10 = vadd.f32 %v1348_v11, %v1492_v35 }
 0x9f1   :  { %1238 = vtanh.f32 %v504_v49 }
 0x9fc   :  { %v1237_v50 = vpop.eup %1236 }
 0x9fd   :  { %485 = vrot.lane.b32.xlu0 %v1237_v50, %s1277_s14 }
 0x9fe   :  { %v1239_v51 = vpop.eup %1238 }
 0x9ff   :  { %507 = vrot.lane.b32.xlu1 %v1239_v51, %s1277_s14 }
 0xa6f   :  { %v486_v52 = vpop.permute.xlu0 %485 }
 0xa70   :  { %v488_v53 = vmul.f32 %v486_v52, %v471_v37 }
 0xa71   :  { %v508_v54 = vpop.permute.xlu1 %507 }
 0xa72   :  { %v1534_v55 = vmul.f32 %v508_v54, %v493_v41  ;;  %512 = vrot.lane.b32.xlu0 %v488_v53, %s1279_s30 }
 0xa74   :  { %516 = vrot.lane.b32.xlu1 %v1534_v55, %s1280_s0 }
 0xae4   :  { %v513_v56 = vpop.permute.xlu0 %512 }
 0xae6   :  { %v517_v57 = vpop.permute.xlu1 %516 }
 0xae7   :  { %v519_v58 = vsel %vm66_vm0, %v513_v56, %v517_v57 }
 0xae8   :  { %v520_v59 = vpack.c.bf16 %v519_v58, %v519_v58 }
 0xaea   :  { %1124 = vmatmul.mubr.msk.bf16.vlgmr.msra.gmra.mxu0 %vm226_vm2, %v520_v59 }
 0xaeb   :  { %729 = vmatpush1.bf16.msra.mxu0 %v1367_v26  ;;  %752 = vmatprep.mubr.bf16.mxu0 %v1278_v34 }
 0xaec   :  { %730 = vmatprep.subr.bf16.mxu0 %v1373_v27 }
 0xaef   :  { %731 = vmatpush1.bf16.msra.mxu0 %v1380_v28 }
 0xaf0   :  { %732 = vmatprep.subr.bf16.mxu0 %v1387_v29 }
 0xaf3   :  { %733 = vmatpush1.bf16.msra.mxu0 %v1394_v30 }
 0xaf4   :  { %734 = vmatprep.subr.bf16.mxu0 %v1401_v31 }
 0xaf7   :  { %735 = vmatpush1.bf16.msra.mxu0 %v1412_v33 }
 0xbaa   :  { %v558_v61 = vpop.f32.mrf.mxu0 }
 0xbab   :  { %v565_v62 = vadd.f32 %v558_v61, %v130_v60 }
 0xbac   :  { %v560_v63 = vpop.f32.mrf.mxu0 }
 0xbad   :  { %v566_v1 = vmul.f32 %v565_v62, %v1350_v13  ;;  %v587_v2 = vadd.f32 %v1437_v44, %v560_v63 }
 0xbae   :  { %v562_v4 = vpop.f32.mrf.mxu0 }
 0xbaf   :  { %1240 = vtanh.f32 %v566_v1  ;;  %v588_v0 = vmul.f32 %v587_v2, %v1350_v13 }
 0xbb0   :  { %v563_v3 = vpop.f32.mrf.mxu0 }
 0xbb1   :  { %1242 = vtanh.f32 %v588_v0 }
 0xbbc   :  { %v1241_v6 = vpop.eup %1240 }
 0xbbd   :  { %572 = vrot.lane.b32.xlu0 %v1241_v6, %s1277_s14  ;;  %v568_v24 = vadd.f32 1.0, %v1241_v6 }
 0xbbe   :  { %v1243_v7 = vpop.eup %1242 }
 0xbbf   :  { %594 = vrot.lane.b32.xlu1 %v1243_v7, %s1277_s14  ;;  %v590_v8 = vadd.f32 1.0, %v1243_v7  ;;  %v569_v9 = vmul.f32 0.5, %v568_v24 }
 0xbc1   :  { %v591_v15 = vmul.f32 0.5, %v590_v8  ;;  %v570_v19 = vmul.f32 %v569_v9, %v482_v47 }
 0xbc3   :  { %v592_v22 = vmul.f32 %v591_v15, %v504_v49 }
 0xc2f   :  { %v573_v12 = vpop.permute.xlu0 %572 }
 0xc30   :  { %v575_v14 = vmul.f32 %v573_v12, %v569_v9 }
 0xc31   :  { %v595_v16 = vpop.permute.xlu1 %594 }
 0xc32   :  { %v597_v17 = vmul.f32 %v595_v16, %v591_v15  ;;  %577 = vrot.lane.b32.xlu0 %v575_v14, %s1277_s14 }
 0xc34   :  { %599 = vrot.lane.b32.xlu1 %v597_v17, %s1277_s14  ;;  %v138_v17 = vadd.f32 %v1486_v23, %v1348_v11 }
 0xca4   :  { %v578_v20 = vpop.permute.xlu0 %577 }
 0xca5   :  { %v580_v21 = vadd.f32 %v578_v20, %v570_v19 }
 0xca6   :  { %v600_v40 = vpop.permute.xlu1 %599 }
 0xca7   :  { %1244 = vtanh.f32 %v580_v21  ;;  %v602_v36 = vadd.f32 %v600_v40, %v592_v22 }
 0xca9   :  { %1246 = vtanh.f32 %v602_v36 }
 0xcb4   :  { %v1245_v37 = vpop.eup %1244 }
 0xcb5   :  { %583 = vrot.lane.b32.xlu0 %v1245_v37, %s1277_s14 }
 0xcb6   :  { %v1247_v38 = vpop.eup %1246 }
 0xcb7   :  { %605 = vrot.lane.b32.xlu1 %v1247_v38, %s1277_s14 }
 0xd27   :  { %v584_v39 = vpop.permute.xlu0 %583 }
 0xd28   :  { %v586_v41 = vmul.f32 %v584_v39, %v569_v9 }
 0xd29   :  { %v606_v42 = vpop.permute.xlu1 %605 }
 0xd2a   :  { %v1560_v43 = vmul.f32 %v606_v42, %v591_v15  ;;  %610 = vrot.lane.b32.xlu0 %v586_v41, %s1279_s30 }
 0xd2c   :  { %614 = vrot.lane.b32.xlu1 %v1560_v43, %s1280_s0 }
 0xd9c   :  { %v611_v45 = vpop.permute.xlu0 %610 }
 0xd9e   :  { %v615_v46 = vpop.permute.xlu1 %614 }
 0xd9f   :  { %v617_v47 = vsel %vm66_vm0, %v611_v45, %v615_v46 }
 0xda0   :  { %v618_v48 = vpack.c.bf16 %v617_v47, %v617_v47 }
 0xda2   :  { %1125 = vmatmul.mubr.msk.bf16.vlgmr.msra.gmra.mxu1 %vm226_vm2, %v618_v48 }
 0xda3   :  { %827 = vmatpush1.bf16.msra.mxu1 %v1367_v26  ;;  %850 = vmatprep.mubr.bf16.mxu1 %v1278_v34 }
 0xda4   :  { %828 = vmatprep.subr.bf16.mxu1 %v1373_v27 }
 0xda7   :  { %829 = vmatpush1.bf16.msra.mxu1 %v1380_v28 }
 0xda8   :  { %830 = vmatprep.subr.bf16.mxu1 %v1387_v29 }
 0xdab   :  { %831 = vmatpush1.bf16.msra.mxu1 %v1394_v30 }
 0xdac   :  { %832 = vmatprep.subr.bf16.mxu1 %v1401_v31 }
 0xdaf   :  { %833 = vmatpush1.bf16.msra.mxu1 %v1412_v33 }
 0xe62   :  { %v656_v49 = vpop.f32.mrf.mxu1 }
 0xe63   :  { %v663_v50 = vadd.f32 %v656_v49, %v133_v10 }
 0xe64   :  { %v658_v26 = vpop.f32.mrf.mxu1 }
 0xe65   :  { %v664_v34 = vmul.f32 %v663_v50, %v1350_v13  ;;  %v685_v51 = vadd.f32 %v1437_v44, %v658_v26 }
 0xe66   :  { %v660_v52 = vpop.f32.mrf.mxu1 }
 0xe67   :  { %1248 = vtanh.f32 %v664_v34  ;;  %v686_v28 = vmul.f32 %v685_v51, %v1350_v13 }
 0xe68   :  { %v661_v53 = vpop.f32.mrf.mxu1 }
 0xe69   :  { %1250 = vtanh.f32 %v686_v28 }
 0xe74   :  { %v1249_v30 = vpop.eup %1248 }
 0xe75   :  { %670 = vrot.lane.b32.xlu0 %v1249_v30, %s1277_s14  ;;  %v666_v35 = vadd.f32 1.0, %v1249_v30 }
 0xe76   :  { %v1251_v33 = vpop.eup %1250 }
 0xe77   :  { %692 = vrot.lane.b32.xlu1 %v1251_v33, %s1277_s14  ;;  %v688_v54 = vadd.f32 1.0, %v1251_v33  ;;  %v667_v56 = vmul.f32 0.5, %v666_v35 }
 0xe79   :  { %v689_v59 = vmul.f32 0.5, %v688_v54  ;;  %v668_v62 = vmul.f32 %v667_v56, %v580_v21 }
 0xe7b   :  { %v690_v2 = vmul.f32 %v689_v59, %v602_v36 }
 0xee7   :  { %v671_v57 = vpop.permute.xlu0 %670 }
 0xee8   :  { %v673_v58 = vmul.f32 %v671_v57, %v667_v56 }
 0xee9   :  { %v693_v60 = vpop.permute.xlu1 %692 }
 0xeea   :  { %v695_v61 = vmul.f32 %v693_v60, %v689_v59  ;;  %675 = vrot.lane.b32.xlu0 %v673_v58, %s1277_s14 }
 0xeec   :  { %697 = vrot.lane.b32.xlu1 %v695_v61, %s1277_s14  ;;  %v141_v61 = vadd.f32 %v1490_v32, %v1348_v11 }
 0xf5c   :  { %v676_v63 = vpop.permute.xlu0 %675 }
 0xf5d   :  { %v678_v1 = vadd.f32 %v676_v63, %v668_v62 }
 0xf5e   :  { %v698_v4 = vpop.permute.xlu1 %697 }
 0xf5f   :  { %1252 = vtanh.f32 %v678_v1  ;;  %v700_v0 = vadd.f32 %v698_v4, %v690_v2 }
 0xf61   :  { %1254 = vtanh.f32 %v700_v0 }
 0xf6c   :  { %v1253_v3 = vpop.eup %1252 }
 0xf6d   :  { %681 = vrot.lane.b32.xlu0 %v1253_v3, %s1277_s14 }
 0xf6e   :  { %v1255_v6 = vpop.eup %1254 }
 0xf6f   :  { %703 = vrot.lane.b32.xlu1 %v1255_v6, %s1277_s14 }
 0xfdf   :  { %v682_v7 = vpop.permute.xlu0 %681 }
 0xfe0   :  { %v684_v24 = vmul.f32 %v682_v7, %v667_v56 }
 0xfe1   :  { %v704_v8 = vpop.permute.xlu1 %703 }
 0xfe2   :  { %v1586_v9 = vmul.f32 %v704_v8, %v689_v59  ;;  %708 = vrot.lane.b32.xlu0 %v684_v24, %s1279_s30 }
 0xfe4   :  { %712 = vrot.lane.b32.xlu1 %v1586_v9, %s1280_s0 }
0x1054   :  { %v709_v12 = vpop.permute.xlu0 %708 }
0x1056   :  { %v713_v14 = vpop.permute.xlu1 %712 }
0x1057   :  { %v715_v15 = vsel %vm66_vm0, %v709_v12, %v713_v14 }
0x1058   :  { %v716_v16 = vpack.c.bf16 %v715_v15, %v715_v15 }
0x105a   :  { %1126 = vmatmul.mubr.msk.bf16.vlgmr.msra.gmra.mxu0 %vm226_vm2, %v716_v16 }
0x111a   :  { %v754_v19 = vpop.f32.mrf.mxu0 }
0x111b   :  { %v761_v20 = vadd.f32 %v754_v19, %v138_v17 }
0x111c   :  { %v756_v21 = vpop.f32.mrf.mxu0 }
0x111d   :  { %v762_v22 = vmul.f32 %v761_v20, %v1350_v13  ;;  %v783_v40 = vadd.f32 %v1437_v44, %v756_v21 }
0x111e   :  { %v758_v36 = vpop.f32.mrf.mxu0 }
0x111f   :  { %1256 = vtanh.f32 %v762_v22  ;;  %v784_v37 = vmul.f32 %v783_v40, %v1350_v13 }
0x1120   :  { %v759_v38 = vpop.f32.mrf.mxu0 }
0x1121   :  { %1258 = vtanh.f32 %v784_v37  ;;  %v1281_v37 = vmov 0.0  }
0x1122   :  { %1165 = vmatprep.subr.bf16.mxu0 %v1281_v37  ;;  %1173 = vmatprep.mubr.msk.bf16.mxu0 %vm1282_vm3, %v1281_v37 }
0x1123   :  { %1166 = vmatpush3.bf16.msra.mxu0 %v1362_v25 }
0x1124   :  { %1167 = vmatprep.subr.bf16.mxu0 %v1281_v37 }
0x1127   :  { %1168 = vmatpush3.bf16.msra.mxu0 %v1373_v27 }
0x1128   :  { %1169 = vmatprep.subr.bf16.mxu0 %v1281_v37 }
0x112b   :  { %1170 = vmatpush3.bf16.msra.mxu0 %v1387_v29 }
0x112c   :  { %v1257_v39 = vpop.eup %1256  ;;  %1171 = vmatprep.subr.bf16.mxu0 %v1281_v37 }
0x112d   :  { %768 = vrot.lane.b32.xlu0 %v1257_v39, %s1277_s14  ;;  %v764_v23 = vadd.f32 1.0, %v1257_v39 }
0x112e   :  { %v1259_v41 = vpop.eup %1258 }
0x112f   :  { %790 = vrot.lane.b32.xlu1 %v1259_v41, %s1277_s14  ;;  %v786_v42 = vadd.f32 1.0, %v1259_v41  ;;  %v765_v45 = vmul.f32 0.5, %v764_v23  ;;  %1172 = vmatpush3.bf16.msra.mxu0 %v1401_v31 }
0x1131   :  { %v787_v48 = vmul.f32 0.5, %v786_v42  ;;  %v766_v50 = vmul.f32 %v765_v45, %v678_v1 }
0x1133   :  { %v788_v51 = vmul.f32 %v787_v48, %v700_v0 }
0x119f   :  { %v769_v46 = vpop.permute.xlu0 %768 }
0x11a0   :  { %v771_v47 = vmul.f32 %v769_v46, %v765_v45 }
0x11a1   :  { %v791_v10 = vpop.permute.xlu1 %790 }
0x11a2   :  { %v793_v49 = vmul.f32 %v791_v10, %v787_v48  ;;  %773 = vrot.lane.b32.xlu0 %v771_v47, %s1277_s14 }
0x11a4   :  { %795 = vrot.lane.b32.xlu1 %v793_v49, %s1277_s14 }
0x1214   :  { %v774_v26 = vpop.permute.xlu0 %773 }
0x1215   :  { %v776_v34 = vadd.f32 %v774_v26, %v766_v50 }
0x1216   :  { %v796_v52 = vpop.permute.xlu1 %795 }
0x1217   :  { %1260 = vtanh.f32 %v776_v34  ;;  %v798_v28 = vadd.f32 %v796_v52, %v788_v51 }
0x1219   :  { %1262 = vtanh.f32 %v798_v28 }
0x1224   :  { %v1261_v53 = vpop.eup %1260 }
0x1225   :  { %779 = vrot.lane.b32.xlu0 %v1261_v53, %s1277_s14  ;;  %v977_v53 = vpack.c.bf16 %v1507_v5, %v1470_v18  ;;  %v1211_v18 = vld [vmem:[%s1687_s5] sm:$0xff]  }
0x1226   :  { %v1263_v30 = vpop.eup %1262 }
0x1227   :  { %801 = vrot.lane.b32.xlu1 %v1263_v30, %s1277_s14 }
0x1297   :  { %v780_v33 = vpop.permute.xlu0 %779 }
0x1298   :  { %v782_v35 = vmul.f32 %v780_v33, %v765_v45 }
0x1299   :  { %v802_v54 = vpop.permute.xlu1 %801 }
0x129a   :  { %v1604_v56 = vmul.f32 %v802_v54, %v787_v48  ;;  %806 = vrot.lane.b32.xlu0 %v782_v35, %s1279_s30  ;;  %v978_v54 = vpack.c.bf16 %v1560_v43, %v1534_v55  ;;  %v1129_v55 = vld [vmem:[%s1688_s6] ss:$0 sm:$0xff] }
0x129c   :  { %810 = vrot.lane.b32.xlu1 %v1604_v56, %s1280_s0 }
0x130c   :  { %v807_v57 = vpop.permute.xlu0 %806 }
0x130e   :  { %v811_v58 = vpop.permute.xlu1 %810 }
0x130f   :  { %v813_v59 = vsel %vm66_vm0, %v807_v57, %v811_v58 }
0x1310   :  { %v814_v60 = vpack.c.bf16 %v813_v59, %v813_v59 }
0x1312   :  { %1127 = vmatmul.mubr.msk.bf16.vlgmr.msra.gmra.mxu1 %vm226_vm2, %v814_v60 }
0x13d2   :  { %v852_v62 = vpop.f32.mrf.mxu1 }
0x13d3   :  { %v859_v63 = vadd.f32 %v852_v62, %v141_v61 }
0x13d4   :  { %v854_v1 = vpop.f32.mrf.mxu1 }
0x13d5   :  { %v860_v2 = vmul.f32 %v859_v63, %v1350_v13  ;;  %v881_v4 = vadd.f32 %v1437_v44, %v854_v1 }
0x13d6   :  { %v856_v0 = vpop.f32.mrf.mxu1 }
0x13d7   :  { %1264 = vtanh.f32 %v860_v2  ;;  %v882_v3 = vmul.f32 %v881_v4, %v1350_v13 }
0x13d8   :  { %v857_v6 = vpop.f32.mrf.mxu1 }
0x13d9   :  { %1266 = vtanh.f32 %v882_v3 }
0x13e4   :  { %v1265_v7 = vpop.eup %1264 }
0x13e5   :  { %866 = vrot.lane.b32.xlu0 %v1265_v7, %s1277_s14  ;;  %v862_v11 = vadd.f32 1.0, %v1265_v7 }
0x13e6   :  { %v1267_v24 = vpop.eup %1266 }
0x13e7   :  { %888 = vrot.lane.b32.xlu1 %v1267_v24, %s1277_s14  ;;  %v884_v32 = vadd.f32 1.0, %v1267_v24  ;;  %v863_v8 = vmul.f32 0.5, %v862_v11 }
0x13e9   :  { %v885_v15 = vmul.f32 0.5, %v884_v32  ;;  %v864_v19 = vmul.f32 %v863_v8, %v776_v34 }
0x13eb   :  { %v886_v22 = vmul.f32 %v885_v15, %v798_v28 }
0x1457   :  { %v867_v12 = vpop.permute.xlu0 %866 }
0x1458   :  { %v869_v14 = vmul.f32 %v867_v12, %v863_v8 }
0x1459   :  { %v889_v16 = vpop.permute.xlu1 %888 }
0x145a   :  { %v891_v17 = vmul.f32 %v889_v16, %v885_v15  ;;  %871 = vrot.lane.b32.xlu0 %v869_v14, %s1277_s14 }
0x145c   :  { %893 = vrot.lane.b32.xlu1 %v891_v17, %s1277_s14 }
0x14cc   :  { %v872_v20 = vpop.permute.xlu0 %871 }
0x14cd   :  { %v874_v21 = vadd.f32 %v872_v20, %v864_v19 }
0x14ce   :  { %v894_v40 = vpop.permute.xlu1 %893 }
0x14cf   :  { %1268 = vtanh.f32 %v874_v21  ;;  %v896_v36 = vadd.f32 %v894_v40, %v886_v22 }
0x14d1   :  { %1270 = vtanh.f32 %v896_v36 }
0x14dc   :  { %v1269_v38 = vpop.eup %1268 }
0x14dd   :  { %877 = vrot.lane.b32.xlu0 %v1269_v38, %s1277_s14 }
0x14de   :  { %v1271_v39 = vpop.eup %1270 }
0x14df   :  { %899 = vrot.lane.b32.xlu1 %v1271_v39, %s1277_s14 }
0x154f   :  { %v878_v41 = vpop.permute.xlu0 %877 }
0x1550   :  { %v880_v23 = vmul.f32 %v878_v41, %v863_v8 }
0x1551   :  { %v900_v25 = vpop.permute.xlu1 %899 }
0x1552   :  { %v902_v42 = vmul.f32 %v900_v25, %v885_v15  ;;  %904 = vrot.lane.b32.xlu0 %v880_v23, %s1279_s30 }
0x1554   :  { %908 = vrot.lane.b32.xlu1 %v902_v42, %s1280_s0 }
0x15c4   :  { %v905_v27 = vpop.permute.xlu0 %904 }
0x15c6   :  { %v909_v45 = vpop.permute.xlu1 %908 }
0x15c7   :  { %v911_v46 = vsel %vm66_vm0, %v905_v27, %v909_v45 }
0x15c8   :  { %v912_v29 = vpack.c.bf16 %v911_v46, %v911_v46 }
0x15ca   :  { %1174 = vmatmul.mubr.msk.bf16.vlgmr.msra.gmra.mxu0 %vm226_vm2, %v912_v29 }
0x168a   :  { %v950_v47 = vpop.f32.mrf.mxu0 }
0x168b   :  { %v951_v31 = vadd.f32 %v1437_v44, %v950_v47  ;;  %v1210_v44 = vld [vmem:[%s1687_s5 + $0x8] sm:$0xff]  }
0x168c   :  { %v1175_v48 = vpop.f32.mrf.mxu0  ;;  %1177 = vmatprep.subr.bf16.mxu1 %v1210_v44 }
0x168d   :  { %v956_v10 = vmul.f32 %v951_v31, %v1350_v13  ;;  %v979_v13 = vpack.c.bf16 %v1604_v56, %v1586_v9  ;;  %1178 = vmatpush3.bf16.msra.mxu1 %v1210_v44 }
0x168e   :  { %v953_v49 = vpop.f32.mrf.mxu0  ;;  %1179 = vmatprep.subr.bf16.mxu1 %v1211_v18 }
0x168f   :  { %1272 = vtanh.f32 %v956_v10 }
0x1690   :  { %v1176_v50 = vpop.f32.mrf.mxu0 }
0x1691   :  { %1180 = vmatpush3.bf16.msra.mxu1 %v1211_v18 }
0x169c   :  { %v1273_v26 = vpop.eup %1272 }
0x169d   :  { %962 = vrot.lane.b32.xlu0 %v1273_v26, %s1277_s14  ;;  %v958_v34 = vadd.f32 1.0, %v1273_v26 }
0x169f   :  { %v959_v51 = vmul.f32 0.5, %v958_v34 }
0x16a1   :  { %v960_v30 = vmul.f32 %v959_v51, %v896_v36 }
0x170f   :  { %v963_v52 = vpop.permute.xlu0 %962 }
0x1710   :  { %v965_v28 = vmul.f32 %v963_v52, %v959_v51 }
0x1712   :  { %967 = vrot.lane.b32.xlu1 %v965_v28, %s1277_s14 }
0x1716   :  { %996 = vrot.lane.b32.xlu1 %v977_v53, %s1279_s30 }
0x171a   :  { %1000 = vrot.lane.b32.xlu1 %v979_v13, %s1279_s30 }
0x1784   :  { %v968_v33 = vpop.permute.xlu1 %967 }
0x1785   :  { %v970_v35 = vadd.f32 %v968_v33, %v960_v30 }
0x1787   :  { %1274 = vtanh.f32 %v970_v35 }
0x1788   :  { %v997_v5 = vpop.permute.xlu1 %996 }
0x1789   :  { %1181 = vmatprep.mubr.msk.bf16.mxu1 %vm66_vm0, %v997_v5 }
0x178c   :  { %v1001_v60 = vpop.permute.xlu1 %1000 }
0x1794   :  { %v1275_v9 = vpop.eup %1274 }
0x1795   :  { %973 = vrot.lane.b32.xlu0 %v1275_v9, %s1277_s14 }
0x1799   :  { %998 = vrot.lane.b32.xlu0 %v978_v54, %s1279_s30 }
0x1807   :  { %v974_v56 = vpop.permute.xlu0 %973 }
0x1808   :  { %v976_v57 = vmul.f32 %v974_v56, %v959_v51 }
0x180a   :  { %v980_v58 = vpack.c.bf16 %v976_v57, %v902_v42 }
0x180b   :  { %v999_v59 = vpop.permute.xlu0 %998 }
0x180c   :  { %1002 = vrot.lane.b32.xlu0 %v980_v58, %s1279_s30  ;;  %1182 = vmatmul.mubr.msk.bf16.vlgmr.msra.gmra.mxu1 %vm66_vm0, %v999_v59 }
0x180d   :  { %1185 = vmatprep.mubr.msk.bf16.mxu1 %vm66_vm0, %v1001_v60 }
0x187e   :  { %v1003_v61 = vpop.permute.xlu0 %1002 }
0x187f   :  { %1186 = vmatmul.mubr.msk.bf16.gmra.mxu1 %vm66_vm0, %v1003_v61 }
0x18cc   :  { %v1183_v43 = vpop.f32.mrf.mxu1 }
0x18cd   :  { %v1071_v62 = vadd.f32 %v1183_v43, %v1129_v55 }
0x18ce   :  { %v1062_v63 = vpop.f32.mrf.mxu1 }
0x18cf   :  { %1095 = vst [vmem:[%s1689_s7 + $0x10] sm:$0xff] %v1071_v62  ;;  %v1063_v1 = vadd.f32 %v1129_v55, %v1062_v63 }
0x18d0   :  { %v1184_v2 = vpop.f32.mrf.mxu1 }
0x18d1   :  { %1093 = vst [vmem:[%s1689_s7] sm:$0xff] %v1063_v1  ;;  %v1074_v4 = vadd.f32 %v1184_v2, %v1129_v55 }
0x18d2   :  { %v1065_v0 = vpop.f32.mrf.mxu1 }
0x18d3   :  { %1096 = vst [vmem:[%s1689_s7 + $0x18] sm:$0xff] %v1074_v4  ;;  %v1066_v3 = vadd.f32 %v1129_v55, %v1065_v0 }
0x18d5   :  { %1094 = vst [vmem:[%s1689_s7 + $0x8] sm:$0xff] %v1066_v3 }
0x193f   :  { %v1187_v6 = vpop.f32.mrf.mxu1 }
0x1940   :  { %v1087_v7 = vadd.f32 %v1187_v6, %v1129_v55 }
0x1941   :  { %v1078_v24 = vpop.f32.mrf.mxu1 }
0x1942   :  { %1099 = vst [vmem:[%s1689_s7 + $0x30] sm:$0xff] %v1087_v7  ;;  %v1079_v11 = vadd.f32 %v1129_v55, %v1078_v24 }
0x1943   :  { %v1188_v32 = vpop.f32.mrf.mxu1 }
0x1944   :  { %1097 = vst [vmem:[%s1689_s7 + $0x20] sm:$0xff] %v1079_v11  ;;  %v1090_v8 = vadd.f32 %v1188_v32, %v1129_v55 }
0x1945   :  { %v1081_v12 = vpop.f32.mrf.mxu1 }
0x1946   :  { %1100 = vst [vmem:[%s1689_s7 + $0x38] sm:$0xff] %v1090_v8  ;;  %v1082_v14 = vadd.f32 %v1129_v55, %v1081_v12 }
0x1948   :  { %1098 = vst [vmem:[%s1689_s7 + $0x28] sm:$0xff] %v1082_v14 }

</bundles_post_ra>
